<compile_context>
chip_gen: v7x
topology: tpu7x:2x2x1
jax: 0.10.0
libtpu: 0.0.40
codegen_flags: <defaults>
</compile_context>

<pallas_src>
import functools

import jax
import jax.numpy as jnp
from jax import lax
from jax.experimental import pallas as pl
from jax.experimental.pallas import tpu as pltpu


def _round_up(n, m):
    return ((n + m - 1) // m) * m


def lstm_linear_kernel(x_ref, wih_ref, whh_ref, b_ref, wlin_ref, blin_ref,
                       out_ref, xg_ref):
    # Shapes (one 8-row batch tile):
    #   x_ref:    (T*8, Ip)    time-major sequence for this batch tile
    #   wih_ref:  (Ip, 4*Hp)   fused input->gate weights, gate order (i, f, o, g)
    #   whh_ref:  (Hp, 4*Hp)   fused hidden->gate weights, same order
    #   b_ref:    (1, 4*Hp)    combined bias (b_ih + b_hh), f32
    #   wlin_ref: (Hp, Cp)     final linear weights
    #   blin_ref: (1, Cp)      final linear bias, f32
    #   out_ref:  (8, Cp)      lane-dense output tile
    #   xg_ref:   (T*8, 4*Hp)  VMEM scratch: precomputed input projection (f32)
    Bt = out_ref.shape[0]
    Hp = whh_ref.shape[0]
    T = x_ref.shape[0] // Bt
    mm_dtype = whh_ref.dtype

    # (1) Input projection + bias for the WHOLE sequence: one lane-dense MXU
    #     matmul hoisted out of the serial recurrence.
    xg_ref[...] = (
        jnp.dot(x_ref[...], wih_ref[...], preferred_element_type=jnp.float32)
        + b_ref[...]
    )

    # (2) Serial recurrence; only h @ W_hh stays inside the time loop.
    def step(t, carry):
        h, c = carry
        row = pl.multiple_of(t * Bt, Bt)
        pre = xg_ref[pl.ds(row, Bt), :] + jnp.dot(
            h.astype(mm_dtype), whh_ref[...],
            preferred_element_type=jnp.float32)                  # (8, 4*Hp)
        # sigmoid(x) == 0.5*tanh(0.5*x) + 0.5 : single EUP push over the
        # contiguous (i|f|o) 3*Hp slab (tanh) instead of exp + reciprocal.
        sig = 0.5 * jnp.tanh(0.5 * pre[:, : 3 * Hp]) + 0.5
        g_g = jnp.tanh(pre[:, 3 * Hp:])
        i_g = sig[:, :Hp]
        f_g = sig[:, Hp:2 * Hp]
        o_g = sig[:, 2 * Hp:]
        c_new = f_g * c + i_g * g_g
        h_new = o_g * jnp.tanh(c_new)
        return h_new, c_new

    h0 = jnp.zeros((Bt, Hp), jnp.float32)
    c0 = jnp.zeros((Bt, Hp), jnp.float32)
    hT, _ = lax.fori_loop(0, T, step, (h0, c0), unroll=True)

    # (3) Final linear layer -> lane-dense (8, Cp) output.
    out_ref[...] = (
        jnp.dot(hT.astype(mm_dtype), wlin_ref[...],
                preferred_element_type=jnp.float32)
        + blin_ref[...]
    )


def init_params(key, input_size, lstm_size, num_classes):
    """Deterministic synthetic parameters, PyTorch-style per-gate (i, f, g, o)."""
    ks = jax.random.split(key, 6)
    bound = 1.0 / jnp.sqrt(jnp.float32(lstm_size))
    wih4 = jax.random.uniform(ks[0], (4, input_size, lstm_size), jnp.float32, -bound, bound)
    whh4 = jax.random.uniform(ks[1], (4, lstm_size, lstm_size), jnp.float32, -bound, bound)
    b_ih = jax.random.uniform(ks[2], (4, 1, lstm_size), jnp.float32, -bound, bound)
    b_hh = jax.random.uniform(ks[3], (4, 1, lstm_size), jnp.float32, -bound, bound)
    b4 = b_ih + b_hh
    wlin = jax.random.uniform(ks[4], (lstm_size, num_classes), jnp.float32, -bound, bound)
    blin = jax.random.uniform(ks[5], (1, num_classes), jnp.float32, -bound, bound)
    return wih4, whh4, b4, wlin, blin


def pack_params(params, input_size, lstm_size, num_classes,
                matmul_dtype=jnp.float32):
    """Fuse per-gate weights into padded, lane-dense (., 4H) slabs.

    Called ONCE at startup (not per forward).  Gates are reordered
    (i, f, g, o) -> (i, f, o, g) so sigmoid applies to one contiguous
    [0, 3*Hp) slab and tanh to [3*Hp, 4*Hp).  Hp is padded to a full 128-lane
    width so each gate occupies whole vregs.  Zero-padding of I, H, C is
    exact: padded h/c lanes stay 0 through the recurrence and padded wlin rows
    are 0, so the result matches the unpadded math.
    On v6e/v7x at larger shapes pass matmul_dtype=jnp.bfloat16 (MXU inputs
    only; gate math and accumulation stay f32).
    """
    wih4, whh4, b4, wlin, blin = params
    Ip = _round_up(input_size, 128)
    Hp = _round_up(lstm_size, 128)          # full 128-lane gate slabs
    Cp = _round_up(num_classes, 128)

    wih_f = jnp.zeros((Ip, 4 * Hp), jnp.float32)
    whh_f = jnp.zeros((Hp, 4 * Hp), jnp.float32)
    b_f = jnp.zeros((1, 4 * Hp), jnp.float32)
    for k, src in enumerate((0, 1, 3, 2)):      # (i, f, o, g) from (i, f, g, o)
        col = k * Hp
        wih_f = wih_f.at[:input_size, col:col + lstm_size].set(wih4[src])
        whh_f = whh_f.at[:lstm_size, col:col + lstm_size].set(whh4[src])
        b_f = b_f.at[:, col:col + lstm_size].set(b4[src])

    wlin_f = jnp.zeros((Hp, Cp), jnp.float32).at[:lstm_size, :num_classes].set(wlin)
    blin_f = jnp.zeros((1, Cp), jnp.float32).at[:, :num_classes].set(blin)

    return (wih_f.astype(matmul_dtype), whh_f.astype(matmul_dtype), b_f,
            wlin_f.astype(matmul_dtype), blin_f)


@functools.partial(jax.jit, static_argnames=("num_classes",))
def rnn_lstm_forward(x, packed, num_classes):
    """x: (B, C, D, H, W) float32 (PyTorch NCDHW). `packed` from pack_params."""
    wih_f, whh_f, b_f, wlin_f, blin_f = packed
    B = x.shape[0]
    T = x.shape[-1]
    input_size = x.shape[1] * x.shape[2] * x.shape[3]
    Ip, fourHp = wih_f.shape
    Hp = fourHp // 4
    Cp = wlin_f.shape[1]
    mm_dtype = wih_f.dtype

    Bp = _round_up(B, 8)
    Bt = Bp // 8                           # number of 8-row batch tiles

    # torch.flatten(x, 1, 3) -> (B, I, T); single transpose to (B, T, I);
    # pad; repack into (Bt, T*8, Ip) time-major batch tiles (fused by XLA).
    x_bti = jnp.transpose(x.reshape(B, input_size, T), (0, 2, 1)).astype(mm_dtype)
    x_bti = jnp.pad(x_bti, ((0, Bp - B), (0, 0), (0, Ip - input_size)))
    x_tiles = (x_bti.reshape(Bt, 8, T, Ip)
               .transpose(0, 2, 1, 3)
               .reshape(Bt, T * 8, Ip))

    # vmem limit sized from the actual footprint (floored at the 32 MiB default).
    itemsize = jnp.dtype(mm_dtype).itemsize
    footprint = (
        2 * T * 8 * Ip * itemsize                        # double-buffered x tile
        + (Ip * 4 * Hp + Hp * 4 * Hp + Hp * Cp) * itemsize  # weights
        + (4 * Hp + Cp) * 4                              # biases (f32)
        + 2 * 8 * Cp * 4                                 # output tile
        + T * 8 * 4 * Hp * 4                             # xg scratch
    )
    vmem_limit = int(min(128 * 1024 * 1024, max(32 * 1024 * 1024, 2 * footprint)))

    out_tiles = pl.pallas_call(
        lstm_linear_kernel,
        out_shape=jax.ShapeDtypeStruct((Bt, 8, Cp), jnp.float32),
        grid=(Bt,),
        in_specs=[
            pl.BlockSpec((None, T * 8, Ip), lambda b: (b, 0, 0)),   # x tile
            pl.BlockSpec((Ip, 4 * Hp), lambda b: (0, 0)),           # W_ih fused
            pl.BlockSpec((Hp, 4 * Hp), lambda b: (0, 0)),           # W_hh fused
            pl.BlockSpec((1, 4 * Hp), lambda b: (0, 0)),            # bias
            pl.BlockSpec((Hp, Cp), lambda b: (0, 0)),               # W_lin
            pl.BlockSpec((1, Cp), lambda b: (0, 0)),                # b_lin
        ],
        out_specs=pl.BlockSpec((None, 8, Cp), lambda b: (b, 0, 0)),
        scratch_shapes=[pltpu.VMEM((T * 8, 4 * Hp), jnp.float32)],
        compiler_params=pltpu.CompilerParams(
            dimension_semantics=("parallel",),
            vmem_limit_bytes=vmem_limit,
        ),
    )(x_tiles, wih_f, whh_f, b_f, wlin_f, blin_f)

    return out_tiles.reshape(Bp, Cp)[:B, :num_classes]


def reference_forward(x, params):
    """Pure-JAX reference matching PyTorch LSTM + Linear semantics."""
    wih4, whh4, b4, wlin, blin = params
    B = x.shape[0]
    T = x.shape[-1]
    x_bti = jnp.transpose(x.reshape(B, -1, T), (0, 2, 1)).astype(jnp.float32)
    H = whh4.shape[1]

    def step(carry, x_t):
        h, c = carry
        gates = [x_t @ wih4[k] + h @ whh4[k] + b4[k] for k in range(4)]
        i_g = jax.nn.sigmoid(gates[0])
        f_g = jax.nn.sigmoid(gates[1])
        g_g = jnp.tanh(gates[2])
        o_g = jax.nn.sigmoid(gates[3])
        c_new = f_g * c + i_g * g_g
        h_new = o_g * jnp.tanh(c_new)
        return (h_new, c_new), None

    h0 = jnp.zeros((B, H), jnp.float32)
    c0 = jnp.zeros((B, H), jnp.float32)
    (hT, _), _ = lax.scan(step, (h0, c0), jnp.transpose(x_bti, (1, 0, 2)))
    return hT @ wlin + blin


if __name__ == "__main__":
    # Small shapes consistent with the module: input_size = C*D*H = 160
    # (matches the module's 80*2), seq len T = W = 8, lstm_size = 24, 1 class.
    B, C, D, Hs, W = 2, 4, 5, 8, 8
    input_size = C * D * Hs
    lstm_size = 24
    num_classes = 1

    key = jax.random.PRNGKey(0)
    kx, kp = jax.random.split(key)
    x = jax.random.normal(kx, (B, C, D, Hs, W), jnp.float32)
    params = init_params(kp, input_size, lstm_size, num_classes)

    # Pre-pack / fuse / pad the weights ONCE, outside the jitted forward.
    packed = pack_params(params, input_size, lstm_size, num_classes,
                         matmul_dtype=jnp.float32)
    packed = jax.block_until_ready(packed)

    out = jax.block_until_ready(
        rnn_lstm_forward(x, packed, num_classes=num_classes))
    ref = jax.block_until_ready(reference_forward(x, params))

    assert out.shape == (B, num_classes), out.shape
    assert jnp.allclose(out, ref, atol=1e-4, rtol=1e-4), (out, ref)
    print("KERNEL_OK")
</pallas_src>

<mosaic_0001>
module attributes {stable_mosaic.version = 11 : i64} {
  func.func @lstm_linear_kernel(%arg0: i32, %arg1: memref<1x64x256xf32, #tpu.memory_space<vmem>>, %arg2: memref<256x512xf32, #tpu.memory_space<vmem>>, %arg3: memref<128x512xf32, #tpu.memory_space<vmem>>, %arg4: memref<1x512xf32, #tpu.memory_space<vmem>>, %arg5: memref<128x128xf32, #tpu.memory_space<vmem>>, %arg6: memref<1x128xf32, #tpu.memory_space<vmem>>, %arg7: memref<1x8x128xf32, #tpu.memory_space<vmem>>, %arg8: memref<64x512xf32, #tpu.memory_space<vmem>>) attributes {dimension_semantics = [#tpu.dimension_semantics<parallel>], iteration_bounds = array<i64: 1>, scalar_prefetch = 0 : i64, scratch_operands = 1 : i64, tpu.core_type = #tpu.core_type<tc>, window_params = [{transform_indices = @transform_0, window_bounds = array<i64: 1, 64, 256>}, {pipeline_mode = #tpu.pipeline_mode<synchronous>, transform_indices = @transform_1, window_bounds = array<i64: 256, 512>}, {pipeline_mode = #tpu.pipeline_mode<synchronous>, transform_indices = @transform_2, window_bounds = array<i64: 128, 512>}, {pipeline_mode = #tpu.pipeline_mode<synchronous>, transform_indices = @transform_3, window_bounds = array<i64: 1, 512>}, {pipeline_mode = #tpu.pipeline_mode<synchronous>, transform_indices = @transform_4, window_bounds = array<i64: 128, 128>}, {pipeline_mode = #tpu.pipeline_mode<synchronous>, transform_indices = @transform_5, window_bounds = array<i64: 1, 128>}, {transform_indices = @transform_6, window_bounds = array<i64: 1, 8, 128>}]} {
    %c0 = arith.constant 0 : index
    %c0_0 = arith.constant 0 : index
    %c0_1 = arith.constant 0 : index
    %0 = vector.load %arg1[%c0, %c0_0, %c0_1] : memref<1x64x256xf32, #tpu.memory_space<vmem>>, vector<1x64x256xf32>
    %1 = vector.shape_cast %0 : vector<1x64x256xf32> to vector<64x256xf32>
    %c0_2 = arith.constant 0 : index
    %c0_3 = arith.constant 0 : index
    %2 = vector.load %arg2[%c0_2, %c0_3] : memref<256x512xf32, #tpu.memory_space<vmem>>, vector<256x512xf32>
    %cst = arith.constant dense<0.000000e+00> : vector<64x512xf32>
    %3 = tpu.matmul %1, %2, %cst {dimension_numbers = #tpu.dot_dimension_numbers<[1], [0], [0], [1], [0, 0, 1, 1], [], []>} : vector<64x256xf32>, vector<256x512xf32>, vector<64x512xf32> -> vector<64x512xf32>
    %c0_4 = arith.constant 0 : index
    %c0_5 = arith.constant 0 : index
    %4 = vector.load %arg4[%c0_4, %c0_5] : memref<1x512xf32, #tpu.memory_space<vmem>>, vector<1x512xf32>
    %5 = vector.broadcast %4 : vector<1x512xf32> to vector<64x512xf32>
    %6 = arith.addf %3, %5 : vector<64x512xf32>
    %c0_6 = arith.constant 0 : index
    %c0_7 = arith.constant 0 : index
    %7 = vector.load %arg8[%c0_6, %c0_7] : memref<64x512xf32, #tpu.memory_space<vmem>>, vector<64x512xf32>
    tpu.vector_store %arg8[%c0_6, %c0_7], %6 {strides = array<i32>} : memref<64x512xf32, #tpu.memory_space<vmem>>, vector<64x512xf32>,
    %cst_8 = arith.constant 0.000000e+00 : f32
    %8 = vector.broadcast %cst_8 : f32 to vector<8x128xf32>
    %cst_9 = arith.constant 0.000000e+00 : f32
    %9 = vector.broadcast %cst_9 : f32 to vector<8x128xf32>
    %c0_i32 = arith.constant 0 : i32
    %c8_i32 = arith.constant 8 : i32
    %10 = arith.muli %c0_i32, %c8_i32 : i32
    %11 = tpu.assume_multiple %10, 8 : i32
    %12 = arith.index_cast %11 : i32 to index
    %c0_10 = arith.constant 0 : index
    %13 = vector.load %arg8[%12, %c0_10] : memref<64x512xf32, #tpu.memory_space<vmem>>, vector<8x512xf32>
    %c0_11 = arith.constant 0 : index
    %c0_12 = arith.constant 0 : index
    %14 = vector.load %arg3[%c0_11, %c0_12] : memref<128x512xf32, #tpu.memory_space<vmem>>, vector<128x512xf32>
    %cst_13 = arith.constant dense<0.000000e+00> : vector<8x512xf32>
    %15 = tpu.matmul %8, %14, %cst_13 {dimension_numbers = #tpu.dot_dimension_numbers<[1], [0], [0], [1], [0, 0, 1, 1], [], []>} : vector<8x128xf32>, vector<128x512xf32>, vector<8x512xf32> -> vector<8x512xf32>
    %16 = arith.addf %13, %15 : vector<8x512xf32>
    %17 = vector.extract_strided_slice %16 {offsets = [0, 0], sizes = [8, 384], strides = [1, 1]} : vector<8x512xf32> to vector<8x384xf32>
    %cst_14 = arith.constant 5.000000e-01 : f32
    %18 = vector.broadcast %cst_14 : f32 to vector<8x384xf32>
    %19 = arith.mulf %18, %17 : vector<8x384xf32>
    %20 = math.tanh %19 : vector<8x384xf32>
    %cst_15 = arith.constant 5.000000e-01 : f32
    %21 = vector.broadcast %cst_15 : f32 to vector<8x384xf32>
    %22 = arith.mulf %21, %20 : vector<8x384xf32>
    %cst_16 = arith.constant 5.000000e-01 : f32
    %23 = vector.broadcast %cst_16 : f32 to vector<8x384xf32>
    %24 = arith.addf %22, %23 : vector<8x384xf32>
    %25 = vector.extract_strided_slice %16 {offsets = [0, 384], sizes = [8, 128], strides = [1, 1]} : vector<8x512xf32> to vector<8x128xf32>
    %26 = math.tanh %25 : vector<8x128xf32>
    %27 = vector.extract_strided_slice %24 {offsets = [0, 0], sizes = [8, 128], strides = [1, 1]} : vector<8x384xf32> to vector<8x128xf32>
    %28 = vector.extract_strided_slice %24 {offsets = [0, 128], sizes = [8, 128], strides = [1, 1]} : vector<8x384xf32> to vector<8x128xf32>
    %29 = vector.extract_strided_slice %24 {offsets = [0, 256], sizes = [8, 128], strides = [1, 1]} : vector<8x384xf32> to vector<8x128xf32>
    %30 = arith.mulf %28, %9 : vector<8x128xf32>
    %31 = arith.mulf %27, %26 : vector<8x128xf32>
    %32 = arith.addf %30, %31 : vector<8x128xf32>
    %33 = math.tanh %32 : vector<8x128xf32>
    %34 = arith.mulf %29, %33 : vector<8x128xf32>
    %c1_i32 = arith.constant 1 : i32
    %c8_i32_17 = arith.constant 8 : i32
    %35 = arith.muli %c1_i32, %c8_i32_17 : i32
    %36 = tpu.assume_multiple %35, 8 : i32
    %37 = arith.index_cast %36 : i32 to index
    %c0_18 = arith.constant 0 : index
    %38 = vector.load %arg8[%37, %c0_18] : memref<64x512xf32, #tpu.memory_space<vmem>>, vector<8x512xf32>
    %c0_19 = arith.constant 0 : index
    %c0_20 = arith.constant 0 : index
    %39 = vector.load %arg3[%c0_19, %c0_20] : memref<128x512xf32, #tpu.memory_space<vmem>>, vector<128x512xf32>
    %cst_21 = arith.constant dense<0.000000e+00> : vector<8x512xf32>
    %40 = tpu.matmul %34, %39, %cst_21 {dimension_numbers = #tpu.dot_dimension_numbers<[1], [0], [0], [1], [0, 0, 1, 1], [], []>} : vector<8x128xf32>, vector<128x512xf32>, vector<8x512xf32> -> vector<8x512xf32>
    %41 = arith.addf %38, %40 : vector<8x512xf32>
    %42 = vector.extract_strided_slice %41 {offsets = [0, 0], sizes = [8, 384], strides = [1, 1]} : vector<8x512xf32> to vector<8x384xf32>
    %cst_22 = arith.constant 5.000000e-01 : f32
    %43 = vector.broadcast %cst_22 : f32 to vector<8x384xf32>
    %44 = arith.mulf %43, %42 : vector<8x384xf32>
    %45 = math.tanh %44 : vector<8x384xf32>
    %cst_23 = arith.constant 5.000000e-01 : f32
    %46 = vector.broadcast %cst_23 : f32 to vector<8x384xf32>
    %47 = arith.mulf %46, %45 : vector<8x384xf32>
    %cst_24 = arith.constant 5.000000e-01 : f32
    %48 = vector.broadcast %cst_24 : f32 to vector<8x384xf32>
    %49 = arith.addf %47, %48 : vector<8x384xf32>
    %50 = vector.extract_strided_slice %41 {offsets = [0, 384], sizes = [8, 128], strides = [1, 1]} : vector<8x512xf32> to vector<8x128xf32>
    %51 = math.tanh %50 : vector<8x128xf32>
    %52 = vector.extract_strided_slice %49 {offsets = [0, 0], sizes = [8, 128], strides = [1, 1]} : vector<8x384xf32> to vector<8x128xf32>
    %53 = vector.extract_strided_slice %49 {offsets = [0, 128], sizes = [8, 128], strides = [1, 1]} : vector<8x384xf32> to vector<8x128xf32>
    %54 = vector.extract_strided_slice %49 {offsets = [0, 256], sizes = [8, 128], strides = [1, 1]} : vector<8x384xf32> to vector<8x128xf32>
    %55 = arith.mulf %53, %32 : vector<8x128xf32>
    %56 = arith.mulf %52, %51 : vector<8x128xf32>
    %57 = arith.addf %55, %56 : vector<8x128xf32>
    %58 = math.tanh %57 : vector<8x128xf32>
    %59 = arith.mulf %54, %58 : vector<8x128xf32>
    %c2_i32 = arith.constant 2 : i32
    %c8_i32_25 = arith.constant 8 : i32
    %60 = arith.muli %c2_i32, %c8_i32_25 : i32
    %61 = tpu.assume_multiple %60, 8 : i32
    %62 = arith.index_cast %61 : i32 to index
    %c0_26 = arith.constant 0 : index
    %63 = vector.load %arg8[%62, %c0_26] : memref<64x512xf32, #tpu.memory_space<vmem>>, vector<8x512xf32>
    %c0_27 = arith.constant 0 : index
    %c0_28 = arith.constant 0 : index
    %64 = vector.load %arg3[%c0_27, %c0_28] : memref<128x512xf32, #tpu.memory_space<vmem>>, vector<128x512xf32>
    %cst_29 = arith.constant dense<0.000000e+00> : vector<8x512xf32>
    %65 = tpu.matmul %59, %64, %cst_29 {dimension_numbers = #tpu.dot_dimension_numbers<[1], [0], [0], [1], [0, 0, 1, 1], [], []>} : vector<8x128xf32>, vector<128x512xf32>, vector<8x512xf32> -> vector<8x512xf32>
    %66 = arith.addf %63, %65 : vector<8x512xf32>
    %67 = vector.extract_strided_slice %66 {offsets = [0, 0], sizes = [8, 384], strides = [1, 1]} : vector<8x512xf32> to vector<8x384xf32>
    %cst_30 = arith.constant 5.000000e-01 : f32
    %68 = vector.broadcast %cst_30 : f32 to vector<8x384xf32>
    %69 = arith.mulf %68, %67 : vector<8x384xf32>
    %70 = math.tanh %69 : vector<8x384xf32>
    %cst_31 = arith.constant 5.000000e-01 : f32
    %71 = vector.broadcast %cst_31 : f32 to vector<8x384xf32>
    %72 = arith.mulf %71, %70 : vector<8x384xf32>
    %cst_32 = arith.constant 5.000000e-01 : f32
    %73 = vector.broadcast %cst_32 : f32 to vector<8x384xf32>
    %74 = arith.addf %72, %73 : vector<8x384xf32>
    %75 = vector.extract_strided_slice %66 {offsets = [0, 384], sizes = [8, 128], strides = [1, 1]} : vector<8x512xf32> to vector<8x128xf32>
    %76 = math.tanh %75 : vector<8x128xf32>
    %77 = vector.extract_strided_slice %74 {offsets = [0, 0], sizes = [8, 128], strides = [1, 1]} : vector<8x384xf32> to vector<8x128xf32>
    %78 = vector.extract_strided_slice %74 {offsets = [0, 128], sizes = [8, 128], strides = [1, 1]} : vector<8x384xf32> to vector<8x128xf32>
    %79 = vector.extract_strided_slice %74 {offsets = [0, 256], sizes = [8, 128], strides = [1, 1]} : vector<8x384xf32> to vector<8x128xf32>
    %80 = arith.mulf %78, %57 : vector<8x128xf32>
    %81 = arith.mulf %77, %76 : vector<8x128xf32>
    %82 = arith.addf %80, %81 : vector<8x128xf32>
    %83 = math.tanh %82 : vector<8x128xf32>
    %84 = arith.mulf %79, %83 : vector<8x128xf32>
    %c3_i32 = arith.constant 3 : i32
    %c8_i32_33 = arith.constant 8 : i32
    %85 = arith.muli %c3_i32, %c8_i32_33 : i32
    %86 = tpu.assume_multiple %85, 8 : i32
    %87 = arith.index_cast %86 : i32 to index
    %c0_34 = arith.constant 0 : index
    %88 = vector.load %arg8[%87, %c0_34] : memref<64x512xf32, #tpu.memory_space<vmem>>, vector<8x512xf32>
    %c0_35 = arith.constant 0 : index
    %c0_36 = arith.constant 0 : index
    %89 = vector.load %arg3[%c0_35, %c0_36] : memref<128x512xf32, #tpu.memory_space<vmem>>, vector<128x512xf32>
    %cst_37 = arith.constant dense<0.000000e+00> : vector<8x512xf32>
    %90 = tpu.matmul %84, %89, %cst_37 {dimension_numbers = #tpu.dot_dimension_numbers<[1], [0], [0], [1], [0, 0, 1, 1], [], []>} : vector<8x128xf32>, vector<128x512xf32>, vector<8x512xf32> -> vector<8x512xf32>
    %91 = arith.addf %88, %90 : vector<8x512xf32>
    %92 = vector.extract_strided_slice %91 {offsets = [0, 0], sizes = [8, 384], strides = [1, 1]} : vector<8x512xf32> to vector<8x384xf32>
    %cst_38 = arith.constant 5.000000e-01 : f32
    %93 = vector.broadcast %cst_38 : f32 to vector<8x384xf32>
    %94 = arith.mulf %93, %92 : vector<8x384xf32>
    %95 = math.tanh %94 : vector<8x384xf32>
    %cst_39 = arith.constant 5.000000e-01 : f32
    %96 = vector.broadcast %cst_39 : f32 to vector<8x384xf32>
    %97 = arith.mulf %96, %95 : vector<8x384xf32>
    %cst_40 = arith.constant 5.000000e-01 : f32
    %98 = vector.broadcast %cst_40 : f32 to vector<8x384xf32>
    %99 = arith.addf %97, %98 : vector<8x384xf32>
    %100 = vector.extract_strided_slice %91 {offsets = [0, 384], sizes = [8, 128], strides = [1, 1]} : vector<8x512xf32> to vector<8x128xf32>
    %101 = math.tanh %100 : vector<8x128xf32>
    %102 = vector.extract_strided_slice %99 {offsets = [0, 0], sizes = [8, 128], strides = [1, 1]} : vector<8x384xf32> to vector<8x128xf32>
    %103 = vector.extract_strided_slice %99 {offsets = [0, 128], sizes = [8, 128], strides = [1, 1]} : vector<8x384xf32> to vector<8x128xf32>
    %104 = vector.extract_strided_slice %99 {offsets = [0, 256], sizes = [8, 128], strides = [1, 1]} : vector<8x384xf32> to vector<8x128xf32>
    %105 = arith.mulf %103, %82 : vector<8x128xf32>
    %106 = arith.mulf %102, %101 : vector<8x128xf32>
    %107 = arith.addf %105, %106 : vector<8x128xf32>
    %108 = math.tanh %107 : vector<8x128xf32>
    %109 = arith.mulf %104, %108 : vector<8x128xf32>
    %c4_i32 = arith.constant 4 : i32
    %c8_i32_41 = arith.constant 8 : i32
    %110 = arith.muli %c4_i32, %c8_i32_41 : i32
    %111 = tpu.assume_multiple %110, 8 : i32
    %112 = arith.index_cast %111 : i32 to index
    %c0_42 = arith.constant 0 : index
    %113 = vector.load %arg8[%112, %c0_42] : memref<64x512xf32, #tpu.memory_space<vmem>>, vector<8x512xf32>
    %c0_43 = arith.constant 0 : index
    %c0_44 = arith.constant 0 : index
    %114 = vector.load %arg3[%c0_43, %c0_44] : memref<128x512xf32, #tpu.memory_space<vmem>>, vector<128x512xf32>
    %cst_45 = arith.constant dense<0.000000e+00> : vector<8x512xf32>
    %115 = tpu.matmul %109, %114, %cst_45 {dimension_numbers = #tpu.dot_dimension_numbers<[1], [0], [0], [1], [0, 0, 1, 1], [], []>} : vector<8x128xf32>, vector<128x512xf32>, vector<8x512xf32> -> vector<8x512xf32>
    %116 = arith.addf %113, %115 : vector<8x512xf32>
    %117 = vector.extract_strided_slice %116 {offsets = [0, 0], sizes = [8, 384], strides = [1, 1]} : vector<8x512xf32> to vector<8x384xf32>
    %cst_46 = arith.constant 5.000000e-01 : f32
    %118 = vector.broadcast %cst_46 : f32 to vector<8x384xf32>
    %119 = arith.mulf %118, %117 : vector<8x384xf32>
    %120 = math.tanh %119 : vector<8x384xf32>
    %cst_47 = arith.constant 5.000000e-01 : f32
    %121 = vector.broadcast %cst_47 : f32 to vector<8x384xf32>
    %122 = arith.mulf %121, %120 : vector<8x384xf32>
    %cst_48 = arith.constant 5.000000e-01 : f32
    %123 = vector.broadcast %cst_48 : f32 to vector<8x384xf32>
    %124 = arith.addf %122, %123 : vector<8x384xf32>
    %125 = vector.extract_strided_slice %116 {offsets = [0, 384], sizes = [8, 128], strides = [1, 1]} : vector<8x512xf32> to vector<8x128xf32>
    %126 = math.tanh %125 : vector<8x128xf32>
    %127 = vector.extract_strided_slice %124 {offsets = [0, 0], sizes = [8, 128], strides = [1, 1]} : vector<8x384xf32> to vector<8x128xf32>
    %128 = vector.extract_strided_slice %124 {offsets = [0, 128], sizes = [8, 128], strides = [1, 1]} : vector<8x384xf32> to vector<8x128xf32>
    %129 = vector.extract_strided_slice %124 {offsets = [0, 256], sizes = [8, 128], strides = [1, 1]} : vector<8x384xf32> to vector<8x128xf32>
    %130 = arith.mulf %128, %107 : vector<8x128xf32>
    %131 = arith.mulf %127, %126 : vector<8x128xf32>
    %132 = arith.addf %130, %131 : vector<8x128xf32>
    %133 = math.tanh %132 : vector<8x128xf32>
    %134 = arith.mulf %129, %133 : vector<8x128xf32>
    %c5_i32 = arith.constant 5 : i32
    %c8_i32_49 = arith.constant 8 : i32
    %135 = arith.muli %c5_i32, %c8_i32_49 : i32
    %136 = tpu.assume_multiple %135, 8 : i32
    %137 = arith.index_cast %136 : i32 to index
    %c0_50 = arith.constant 0 : index
    %138 = vector.load %arg8[%137, %c0_50] : memref<64x512xf32, #tpu.memory_space<vmem>>, vector<8x512xf32>
    %c0_51 = arith.constant 0 : index
    %c0_52 = arith.constant 0 : index
    %139 = vector.load %arg3[%c0_51, %c0_52] : memref<128x512xf32, #tpu.memory_space<vmem>>, vector<128x512xf32>
    %cst_53 = arith.constant dense<0.000000e+00> : vector<8x512xf32>
    %140 = tpu.matmul %134, %139, %cst_53 {dimension_numbers = #tpu.dot_dimension_numbers<[1], [0], [0], [1], [0, 0, 1, 1], [], []>} : vector<8x128xf32>, vector<128x512xf32>, vector<8x512xf32> -> vector<8x512xf32>
    %141 = arith.addf %138, %140 : vector<8x512xf32>
    %142 = vector.extract_strided_slice %141 {offsets = [0, 0], sizes = [8, 384], strides = [1, 1]} : vector<8x512xf32> to vector<8x384xf32>
    %cst_54 = arith.constant 5.000000e-01 : f32
    %143 = vector.broadcast %cst_54 : f32 to vector<8x384xf32>
    %144 = arith.mulf %143, %142 : vector<8x384xf32>
    %145 = math.tanh %144 : vector<8x384xf32>
    %cst_55 = arith.constant 5.000000e-01 : f32
    %146 = vector.broadcast %cst_55 : f32 to vector<8x384xf32>
    %147 = arith.mulf %146, %145 : vector<8x384xf32>
    %cst_56 = arith.constant 5.000000e-01 : f32
    %148 = vector.broadcast %cst_56 : f32 to vector<8x384xf32>
    %149 = arith.addf %147, %148 : vector<8x384xf32>
    %150 = vector.extract_strided_slice %141 {offsets = [0, 384], sizes = [8, 128], strides = [1, 1]} : vector<8x512xf32> to vector<8x128xf32>
    %151 = math.tanh %150 : vector<8x128xf32>
    %152 = vector.extract_strided_slice %149 {offsets = [0, 0], sizes = [8, 128], strides = [1, 1]} : vector<8x384xf32> to vector<8x128xf32>
    %153 = vector.extract_strided_slice %149 {offsets = [0, 128], sizes = [8, 128], strides = [1, 1]} : vector<8x384xf32> to vector<8x128xf32>
    %154 = vector.extract_strided_slice %149 {offsets = [0, 256], sizes = [8, 128], strides = [1, 1]} : vector<8x384xf32> to vector<8x128xf32>
    %155 = arith.mulf %153, %132 : vector<8x128xf32>
    %156 = arith.mulf %152, %151 : vector<8x128xf32>
    %157 = arith.addf %155, %156 : vector<8x128xf32>
    %158 = math.tanh %157 : vector<8x128xf32>
    %159 = arith.mulf %154, %158 : vector<8x128xf32>
    %c6_i32 = arith.constant 6 : i32
    %c8_i32_57 = arith.constant 8 : i32
    %160 = arith.muli %c6_i32, %c8_i32_57 : i32
    %161 = tpu.assume_multiple %160, 8 : i32
    %162 = arith.index_cast %161 : i32 to index
    %c0_58 = arith.constant 0 : index
    %163 = vector.load %arg8[%162, %c0_58] : memref<64x512xf32, #tpu.memory_space<vmem>>, vector<8x512xf32>
    %c0_59 = arith.constant 0 : index
    %c0_60 = arith.constant 0 : index
    %164 = vector.load %arg3[%c0_59, %c0_60] : memref<128x512xf32, #tpu.memory_space<vmem>>, vector<128x512xf32>
    %cst_61 = arith.constant dense<0.000000e+00> : vector<8x512xf32>
    %165 = tpu.matmul %159, %164, %cst_61 {dimension_numbers = #tpu.dot_dimension_numbers<[1], [0], [0], [1], [0, 0, 1, 1], [], []>} : vector<8x128xf32>, vector<128x512xf32>, vector<8x512xf32> -> vector<8x512xf32>
    %166 = arith.addf %163, %165 : vector<8x512xf32>
    %167 = vector.extract_strided_slice %166 {offsets = [0, 0], sizes = [8, 384], strides = [1, 1]} : vector<8x512xf32> to vector<8x384xf32>
    %cst_62 = arith.constant 5.000000e-01 : f32
    %168 = vector.broadcast %cst_62 : f32 to vector<8x384xf32>
    %169 = arith.mulf %168, %167 : vector<8x384xf32>
    %170 = math.tanh %169 : vector<8x384xf32>
    %cst_63 = arith.constant 5.000000e-01 : f32
    %171 = vector.broadcast %cst_63 : f32 to vector<8x384xf32>
    %172 = arith.mulf %171, %170 : vector<8x384xf32>
    %cst_64 = arith.constant 5.000000e-01 : f32
    %173 = vector.broadcast %cst_64 : f32 to vector<8x384xf32>
    %174 = arith.addf %172, %173 : vector<8x384xf32>
    %175 = vector.extract_strided_slice %166 {offsets = [0, 384], sizes = [8, 128], strides = [1, 1]} : vector<8x512xf32> to vector<8x128xf32>
    %176 = math.tanh %175 : vector<8x128xf32>
    %177 = vector.extract_strided_slice %174 {offsets = [0, 0], sizes = [8, 128], strides = [1, 1]} : vector<8x384xf32> to vector<8x128xf32>
    %178 = vector.extract_strided_slice %174 {offsets = [0, 128], sizes = [8, 128], strides = [1, 1]} : vector<8x384xf32> to vector<8x128xf32>
    %179 = vector.extract_strided_slice %174 {offsets = [0, 256], sizes = [8, 128], strides = [1, 1]} : vector<8x384xf32> to vector<8x128xf32>
    %180 = arith.mulf %178, %157 : vector<8x128xf32>
    %181 = arith.mulf %177, %176 : vector<8x128xf32>
    %182 = arith.addf %180, %181 : vector<8x128xf32>
    %183 = math.tanh %182 : vector<8x128xf32>
    %184 = arith.mulf %179, %183 : vector<8x128xf32>
    %c7_i32 = arith.constant 7 : i32
    %c8_i32_65 = arith.constant 8 : i32
    %185 = arith.muli %c7_i32, %c8_i32_65 : i32
    %186 = tpu.assume_multiple %185, 8 : i32
    %187 = arith.index_cast %186 : i32 to index
    %c0_66 = arith.constant 0 : index
    %188 = vector.load %arg8[%187, %c0_66] : memref<64x512xf32, #tpu.memory_space<vmem>>, vector<8x512xf32>
    %c0_67 = arith.constant 0 : index
    %c0_68 = arith.constant 0 : index
    %189 = vector.load %arg3[%c0_67, %c0_68] : memref<128x512xf32, #tpu.memory_space<vmem>>, vector<128x512xf32>
    %cst_69 = arith.constant dense<0.000000e+00> : vector<8x512xf32>
    %190 = tpu.matmul %184, %189, %cst_69 {dimension_numbers = #tpu.dot_dimension_numbers<[1], [0], [0], [1], [0, 0, 1, 1], [], []>} : vector<8x128xf32>, vector<128x512xf32>, vector<8x512xf32> -> vector<8x512xf32>
    %191 = arith.addf %188, %190 : vector<8x512xf32>
    %192 = vector.extract_strided_slice %191 {offsets = [0, 0], sizes = [8, 384], strides = [1, 1]} : vector<8x512xf32> to vector<8x384xf32>
    %cst_70 = arith.constant 5.000000e-01 : f32
    %193 = vector.broadcast %cst_70 : f32 to vector<8x384xf32>
    %194 = arith.mulf %193, %192 : vector<8x384xf32>
    %195 = math.tanh %194 : vector<8x384xf32>
    %cst_71 = arith.constant 5.000000e-01 : f32
    %196 = vector.broadcast %cst_71 : f32 to vector<8x384xf32>
    %197 = arith.mulf %196, %195 : vector<8x384xf32>
    %cst_72 = arith.constant 5.000000e-01 : f32
    %198 = vector.broadcast %cst_72 : f32 to vector<8x384xf32>
    %199 = arith.addf %197, %198 : vector<8x384xf32>
    %200 = vector.extract_strided_slice %191 {offsets = [0, 384], sizes = [8, 128], strides = [1, 1]} : vector<8x512xf32> to vector<8x128xf32>
    %201 = math.tanh %200 : vector<8x128xf32>
    %202 = vector.extract_strided_slice %199 {offsets = [0, 0], sizes = [8, 128], strides = [1, 1]} : vector<8x384xf32> to vector<8x128xf32>
    %203 = vector.extract_strided_slice %199 {offsets = [0, 128], sizes = [8, 128], strides = [1, 1]} : vector<8x384xf32> to vector<8x128xf32>
    %204 = vector.extract_strided_slice %199 {offsets = [0, 256], sizes = [8, 128], strides = [1, 1]} : vector<8x384xf32> to vector<8x128xf32>
    %205 = arith.mulf %203, %182 : vector<8x128xf32>
    %206 = arith.mulf %202, %201 : vector<8x128xf32>
    %207 = arith.addf %205, %206 : vector<8x128xf32>
    %208 = math.tanh %207 : vector<8x128xf32>
    %209 = arith.mulf %204, %208 : vector<8x128xf32>
    %c8_i32_73 = arith.constant 8 : i32
    %c0_74 = arith.constant 0 : index
    %c0_75 = arith.constant 0 : index
    %210 = vector.load %arg5[%c0_74, %c0_75] : memref<128x128xf32, #tpu.memory_space<vmem>>, vector<128x128xf32>
    %cst_76 = arith.constant dense<0.000000e+00> : vector<8x128xf32>
    %211 = tpu.matmul %209, %210, %cst_76 {dimension_numbers = #tpu.dot_dimension_numbers<[1], [0], [0], [1], [0, 0, 1, 1], [], []>} : vector<8x128xf32>, vector<128x128xf32>, vector<8x128xf32> -> vector<8x128xf32>
    %c0_77 = arith.constant 0 : index
    %c0_78 = arith.constant 0 : index
    %212 = vector.load %arg6[%c0_77, %c0_78] : memref<1x128xf32, #tpu.memory_space<vmem>>, vector<1x128xf32>
    %213 = vector.broadcast %212 : vector<1x128xf32> to vector<8x128xf32>
    %214 = arith.addf %211, %213 : vector<8x128xf32>
    %c0_79 = arith.constant 0 : index
    %c0_80 = arith.constant 0 : index
    %c0_81 = arith.constant 0 : index
    %215 = vector.load %arg7[%c0_79, %c0_80, %c0_81] : memref<1x8x128xf32, #tpu.memory_space<vmem>>, vector<1x8x128xf32>
    %216 = vector.shape_cast %215 : vector<1x8x128xf32> to vector<8x128xf32>
    %217 = vector.shape_cast %214 : vector<8x128xf32> to vector<1x8x128xf32>
    tpu.vector_store %arg7[%c0_79, %c0_80, %c0_81], %217 {strides = array<i32>} : memref<1x8x128xf32, #tpu.memory_space<vmem>>, vector<1x8x128xf32>,
    return
  }
  func.func @transform_0(%arg0: i32) -> (i32, i32, i32) {
    %c0_i32 = arith.constant 0 : i32
    %c0_i32_0 = arith.constant 0 : i32
    %c0_i32_1 = arith.constant 0 : i32
    return %arg0, %c0_i32, %c0_i32_0 : i32, i32, i32
  }
  func.func @transform_1(%arg0: i32) -> (i32, i32) {
    %c0_i32 = arith.constant 0 : i32
    %c0_i32_0 = arith.constant 0 : i32
    %c0_i32_1 = arith.constant 0 : i32
    return %c0_i32, %c0_i32_0 : i32, i32
  }
  func.func @transform_2(%arg0: i32) -> (i32, i32) {
    %c0_i32 = arith.constant 0 : i32
    %c0_i32_0 = arith.constant 0 : i32
    %c0_i32_1 = arith.constant 0 : i32
    return %c0_i32, %c0_i32_0 : i32, i32
  }
  func.func @transform_3(%arg0: i32) -> (i32, i32) {
    %c0_i32 = arith.constant 0 : i32
    %c0_i32_0 = arith.constant 0 : i32
    %c0_i32_1 = arith.constant 0 : i32
    return %c0_i32, %c0_i32_0 : i32, i32
  }
  func.func @transform_4(%arg0: i32) -> (i32, i32) {
    %c0_i32 = arith.constant 0 : i32
    %c0_i32_0 = arith.constant 0 : i32
    %c0_i32_1 = arith.constant 0 : i32
    return %c0_i32, %c0_i32_0 : i32, i32
  }
  func.func @transform_5(%arg0: i32) -> (i32, i32) {
    %c0_i32 = arith.constant 0 : i32
    %c0_i32_0 = arith.constant 0 : i32
    %c0_i32_1 = arith.constant 0 : i32
    return %c0_i32, %c0_i32_0 : i32, i32
  }
  func.func @transform_6(%arg0: i32) -> (i32, i32, i32) {
    %c0_i32 = arith.constant 0 : i32
    %c0_i32_0 = arith.constant 0 : i32
    %c0_i32_1 = arith.constant 0 : i32
    return %arg0, %c0_i32, %c0_i32_0 : i32, i32, i32
  }
}

</mosaic_0001>

<bundles_post_ra>
// kernel: rnn_lstm_forward.1
= control target key start
LH: loop header
LB: loop body
LE: loop exit
PB: predicated region body
PF: predicated region fallthrough
CT: control target
= control target key end

     0   :  { %11 = vsyncpa [#allocation4], 0  ;;  %s3656_s0 = inlined_call_operand.vmem [shape: f32[1,64,256], index: 0, kind: input, shape index: {}]   ;;  %s3657_s1 = inlined_call_operand.hbm [shape: f32[256,512], index: 1, kind: input, shape index: {}]   ;;  %s3658_s2 = inlined_call_operand.vmem [shape: f32[128,512], index: 2, kind: input, shape index: {}]   ;;  %s3659_s3 = inlined_call_operand.vmem [shape: f32[1,512], index: 3, kind: input, shape index: {}]   ;;  %s3660_s4 = inlined_call_operand.hbm [shape: f32[128,128], index: 4, kind: input, shape index: {}]   ;;  %s3661_s5 = inlined_call_operand.vmem [shape: f32[1,128], index: 5, kind: input, shape index: {}]   ;;  %s3662_s6 = inlined_call_operand.vmem [shape: f32[1,8,128], index: 6, kind: output, shape index: {}]  }
   0x1   :  { %12 = vsyncpa [#allocation6], 0  ;;  %s2932_s21 = smov [#allocation3]   ;;  %s2884_s25 = scalar_lea.hbm %s3657_s1, 16384 }
   0x2   :  { %s20_s22 = sshll.u32 %s2932_s21, 4  ;;  %p2885_p0 = scmp.ne.s32.totalorder %s3657_s1, %s2884_s25  ;;  %s21_s22 = int_to_ptr.vmem [resolvable:$true] %s20_s22 }
   0x3   :  { %p2888_p1 = scmp.lt.u32.totalorder %s2884_s25, %s3657_s1 }
   0x5   :  { %p2890_p2 = pnand %p2888_p1, %p2885_p0 }
   0x7   :  { %2893 = shalt.err (!%p2890_p2)
}
   0x8   :  { %s2894_s30 = scalar_lea.vmem %s21_s22, 16384  ;;  %p2899_p4 = scmp.lt.s32.totalorder %s21_s22, %s21_s22 }
   0x9   :  { %p2895_p3 = scmp.ne.s32.totalorder %s21_s22, %s2894_s30  ;;  %p2900_p5 = scmp.lt.s32.totalorder %s2894_s30, %s2894_s30 }
   0xb   :  { %p2901_p6 = por %p2900_p5, %p2899_p4 }
   0xd   :  { %p2902_p7 = pnand %p2901_p6, %p2895_p3 }
   0xf   :  { %2905 = shalt.err (!%p2902_p7)
}
  0x10   :  { %s2933_s7 = smov 512   ;;  %s2934_s8 = smov 32  }
  0x11   :  { %26 = dma.hbm_to_vmem [thread:$0]  %s3657_s1, 16384, %s21_s22, [#allocation4], %s2933_s7, %s2933_s7, %s2934_s8  }
  0x12   :  { %s2935_s11 = smov [#allocation5]   ;;  %s2906_s15 = scalar_lea.hbm %s3660_s4, 2048 }
  0x13   :  { %s36_s12 = sshll.u32 %s2935_s11, 4  ;;  %p2907_p8 = scmp.ne.s32.totalorder %s3660_s4, %s2906_s15  ;;  %s37_s12 = int_to_ptr.vmem [resolvable:$true] %s36_s12 }
  0x14   :  { %p2910_p9 = scmp.lt.u32.totalorder %s2906_s15, %s3660_s4 }
  0x16   :  { %p2912_p10 = pnand %p2910_p9, %p2907_p8 }
  0x18   :  { %2915 = shalt.err (!%p2912_p10)
}
  0x19   :  { %s2916_s20 = scalar_lea.vmem %s37_s12, 2048  ;;  %p2921_p12 = scmp.lt.s32.totalorder %s37_s12, %s37_s12 }
  0x1a   :  { %p2917_p11 = scmp.ne.s32.totalorder %s37_s12, %s2916_s20  ;;  %p2922_p13 = scmp.lt.s32.totalorder %s2916_s20, %s2916_s20 }
  0x1c   :  { %p2923_p0 = por %p2922_p13, %p2921_p12 }
  0x1e   :  { %p2924_p1 = pnand %p2923_p0, %p2917_p11 }
  0x20   :  { %2927 = shalt.err (!%p2924_p1)
}
  0x21   :  { %s2936_s1 = smov 128   ;;  %s2937_s21 = smov 8  }
  0x22   :  { %42 = dma.hbm_to_vmem [thread:$0]  %s3660_s4, 2048, %s37_s12, [#allocation6], %s2936_s1, %s2936_s1, %s2937_s21  }
  0x23   :  { %2928 = dma.done.wait [#allocation4], 16384  }
  0x24   :  { %2929 = vsyncadd [#allocation4], 4294950912 }
  0x25   :  { %2930 = dma.done.wait [#allocation6], 2048  }
  0x26   :  { %2931 = vsyncadd [#allocation6], 4294965248  ;;  %v68_v0 = vld [vmem:[#allocation3 + $0x8] sm:$0xff]  ;;  %v70_v2 = vld [vmem:[#allocation3 + $0x18] sm:$0xff]  ;;  %vm2940_vm0 = vmmov 0  }
  0x27   :  { %v72_v1 = vld [vmem:[#allocation3 + $0x28] sm:$0xff]  ;;  %v74_v4 = vld [vmem:[#allocation3 + $0x38] sm:$0xff]  ;;  %v67_v5 = vld [vmem:[#allocation3] sm:$0xff] }
  0x28   :  { %v2067_v3 = vpack.c.bf16 %v72_v1, %v68_v0  ;;  %v71_v6 = vld [vmem:[#allocation3 + $0x20] sm:$0xff]  ;;  %v2131_v7 = vpack.c.bf16 %v74_v4, %v70_v2  ;;  %v69_v9 = vld [vmem:[#allocation3 + $0x10] sm:$0xff]  ;;  %v76_v11 = vld [vmem:[#allocation3 + $0x48] sm:$0xff] }
  0x29   :  { %v2069_v8 = vpack.c.bf16 %v71_v6, %v67_v5  ;;  %v73_v10 = vld [vmem:[#allocation3 + $0x30] sm:$0xff]  ;;  %v80_v13 = vld [vmem:[#allocation3 + $0x68] sm:$0xff]  ;;  %v78_v14 = vld [vmem:[#allocation3 + $0x58] sm:$0xff] }
  0x2a   :  { %2068 = vmatprep.subr.bf16.mxu0 %v2067_v3  ;;  %v2133_v12 = vpack.c.bf16 %v73_v10, %v69_v9  ;;  %v82_v15 = vld [vmem:[#allocation3 + $0x78] sm:$0xff]  ;;  %2132 = vmatprep.subr.bf16.mxu1 %v2131_v7  ;;  %v2071_v16 = vpack.c.bf16 %v80_v13, %v76_v11  ;;  %v75_v18 = vld [vmem:[#allocation3 + $0x40] sm:$0xff]  ;;  %v77_v20 = vld [vmem:[#allocation3 + $0x50] sm:$0xff] }
  0x2b   :  { %2070 = vmatpush1.bf16.msra.mxu0 %v2069_v8  ;;  %v2135_v17 = vpack.c.bf16 %v82_v15, %v78_v14  ;;  %v79_v19 = vld [vmem:[#allocation3 + $0x60] sm:$0xff]  ;;  %v81_v22 = vld [vmem:[#allocation3 + $0x70] sm:$0xff]  ;;  %v84_v23 = vld [vmem:[#allocation3 + $0x88] sm:$0xff] }
  0x2c   :  { %2134 = vmatpush1.bf16.msra.mxu1 %v2133_v12  ;;  %v2073_v21 = vpack.c.bf16 %v79_v19, %v75_v18  ;;  %v88_v24 = vld [vmem:[#allocation3 + $0xa8] sm:$0xff]  ;;  %2072 = vmatprep.subr.bf16.mxu0 %v2071_v16  ;;  %v2137_v25 = vpack.c.bf16 %v81_v22, %v77_v20  ;;  %v86_v27 = vld [vmem:[#allocation3 + $0x98] sm:$0xff]  ;;  %v83_v29 = vld [vmem:[#allocation3 + $0x80] sm:$0xff] }
  0x2d   :  { %2136 = vmatprep.subr.bf16.mxu1 %v2135_v17  ;;  %v2075_v26 = vpack.c.bf16 %v88_v24, %v84_v23  ;;  %v90_v28 = vld [vmem:[#allocation3 + $0xb8] sm:$0xff]  ;;  %v87_v31 = vld [vmem:[#allocation3 + $0xa0] sm:$0xff]  ;;  %v85_v32 = vld [vmem:[#allocation3 + $0x90] sm:$0xff] }
  0x2e   :  { %v2139_v30 = vpack.c.bf16 %v90_v28, %v86_v27  ;;  %v89_v33 = vld [vmem:[#allocation3 + $0xb0] sm:$0xff]  ;;  %v2077_v34 = vpack.c.bf16 %v87_v31, %v83_v29  ;;  %v92_v35 = vld [vmem:[#allocation3 + $0xc8] sm:$0xff]  ;;  %v94_v37 = vld [vmem:[#allocation3 + $0xd8] sm:$0xff] }
  0x2f   :  { %2074 = vmatpush1.bf16.msra.mxu0 %v2073_v21  ;;  %v96_v36 = vld [vmem:[#allocation3 + $0xe8] sm:$0xff]  ;;  %v2141_v38 = vpack.c.bf16 %v89_v33, %v85_v32  ;;  %v98_v40 = vld [vmem:[#allocation3 + $0xf8] sm:$0xff]  ;;  %v91_v41 = vld [vmem:[#allocation3 + $0xc0] sm:$0xff] }
  0x30   :  { %2138 = vmatpush1.bf16.msra.mxu1 %v2137_v25  ;;  %2076 = vmatprep.subr.bf16.mxu0 %v2075_v26  ;;  %v2079_v39 = vpack.c.bf16 %v96_v36, %v92_v35  ;;  %v95_v42 = vld [vmem:[#allocation3 + $0xe0] sm:$0xff]  ;;  %v2143_v43 = vpack.c.bf16 %v98_v40, %v94_v37  ;;  %v93_v44 = vld [vmem:[#allocation3 + $0xd0] sm:$0xff]  ;;  %v100_v46 = vld [vmem:[#allocation3 + $0x108] sm:$0xff] }
  0x31   :  { %2140 = vmatprep.subr.bf16.mxu1 %v2139_v30  ;;  %v97_v45 = vld [vmem:[#allocation3 + $0xf0] sm:$0xff]  ;;  %v104_v47 = vld [vmem:[#allocation3 + $0x128] sm:$0xff]  ;;  %v102_v48 = vld [vmem:[#allocation3 + $0x118] sm:$0xff]  ;;  %v2081_v50 = vpack.c.bf16 %v95_v42, %v91_v41 }
  0x32   :  { %v106_v49 = vld [vmem:[#allocation3 + $0x138] sm:$0xff]  ;;  %v2145_v51 = vpack.c.bf16 %v97_v45, %v93_v44  ;;  %v2083_v52 = vpack.c.bf16 %v104_v47, %v100_v46  ;;  %v99_v53 = vld [vmem:[#allocation3 + $0x100] sm:$0xff]  ;;  %v101_v55 = vld [vmem:[#allocation3 + $0x110] sm:$0xff] }
  0x33   :  { %2078 = vmatpush1.bf16.msra.mxu0 %v2077_v34  ;;  %v103_v54 = vld [vmem:[#allocation3 + $0x120] sm:$0xff]  ;;  %v2147_v56 = vpack.c.bf16 %v106_v49, %v102_v48  ;;  %v105_v57 = vld [vmem:[#allocation3 + $0x130] sm:$0xff]  ;;  %v108_v58 = vld [vmem:[#allocation3 + $0x148] sm:$0xff] }
  0x34   :  { %2142 = vmatpush1.bf16.msra.mxu1 %v2141_v38  ;;  %2080 = vmatprep.subr.bf16.mxu0 %v2079_v39  ;;  %v112_v59 = vld [vmem:[#allocation3 + $0x168] sm:$0xff]  ;;  %v110_v60 = vld [vmem:[#allocation3 + $0x158] sm:$0xff]  ;;  %v2085_v62 = vpack.c.bf16 %v103_v54, %v99_v53  ;;  %v2149_v63 = vpack.c.bf16 %v105_v57, %v101_v55  ;;  %v107_v1 = vld [vmem:[#allocation3 + $0x140] sm:$0xff] }
  0x35   :  { %2144 = vmatprep.subr.bf16.mxu1 %v2143_v43  ;;  %v114_v61 = vld [vmem:[#allocation3 + $0x178] sm:$0xff]  ;;  %v2087_v0 = vpack.c.bf16 %v112_v59, %v108_v58  ;;  %v111_v2 = vld [vmem:[#allocation3 + $0x160] sm:$0xff]  ;;  %v109_v3 = vld [vmem:[#allocation3 + $0x150] sm:$0xff] }
  0x36   :  { %v2151_v4 = vpack.c.bf16 %v114_v61, %v110_v60  ;;  %v113_v5 = vld [vmem:[#allocation3 + $0x170] sm:$0xff]  ;;  %v116_v6 = vld [vmem:[#allocation3 + $0x188] sm:$0xff]  ;;  %v118_v8 = vld [vmem:[#allocation3 + $0x198] sm:$0xff]  ;;  %v2089_v10 = vpack.c.bf16 %v111_v2, %v107_v1 }
  0x37   :  { %2082 = vmatpush1.bf16.msra.mxu0 %v2081_v50  ;;  %v120_v7 = vld [vmem:[#allocation3 + $0x1a8] sm:$0xff]  ;;  %v122_v9 = vld [vmem:[#allocation3 + $0x1b8] sm:$0xff]  ;;  %v2153_v11 = vpack.c.bf16 %v113_v5, %v109_v3  ;;  %v115_v13 = vld [vmem:[#allocation3 + $0x180] sm:$0xff] }
  0x38   :  { %2146 = vmatpush1.bf16.msra.mxu1 %v2145_v51  ;;  %2084 = vmatprep.subr.bf16.mxu0 %v2083_v52  ;;  %v2091_v12 = vpack.c.bf16 %v120_v7, %v116_v6  ;;  %v119_v14 = vld [vmem:[#allocation3 + $0x1a0] sm:$0xff]  ;;  %v117_v15 = vld [vmem:[#allocation3 + $0x190] sm:$0xff]  ;;  %v2155_v16 = vpack.c.bf16 %v122_v9, %v118_v8  ;;  %v124_v18 = vld [vmem:[#allocation3 + $0x1c8] sm:$0xff] }
  0x39   :  { %2148 = vmatprep.subr.bf16.mxu1 %v2147_v56  ;;  %v121_v17 = vld [vmem:[#allocation3 + $0x1b0] sm:$0xff]  ;;  %v128_v19 = vld [vmem:[#allocation3 + $0x1e8] sm:$0xff]  ;;  %v126_v20 = vld [vmem:[#allocation3 + $0x1d8] sm:$0xff]  ;;  %v2093_v22 = vpack.c.bf16 %v119_v14, %v115_v13 }
  0x3a   :  { %v130_v21 = vld [vmem:[#allocation3 + $0x1f8] sm:$0xff]  ;;  %v2157_v23 = vpack.c.bf16 %v121_v17, %v117_v15  ;;  %v2095_v24 = vpack.c.bf16 %v128_v19, %v124_v18  ;;  %v123_v25 = vld [vmem:[#allocation3 + $0x1c0] sm:$0xff]  ;;  %v125_v27 = vld [vmem:[#allocation3 + $0x1d0] sm:$0xff] }
  0x3b   :  { %2086 = vmatpush1.bf16.msra.mxu0 %v2085_v62  ;;  %v127_v26 = vld [vmem:[#allocation3 + $0x1e0] sm:$0xff]  ;;  %v2159_v28 = vpack.c.bf16 %v130_v21, %v126_v20  ;;  %v129_v29 = vld [vmem:[#allocation3 + $0x1f0] sm:$0xff]  ;;  %v132_v30 = vld [vmem:[#allocation3 + $0x208] sm:$0xff] }
  0x3c   :  { %2150 = vmatpush1.bf16.msra.mxu1 %v2149_v63  ;;  %2088 = vmatprep.subr.bf16.mxu0 %v2087_v0  ;;  %v136_v31 = vld [vmem:[#allocation3 + $0x228] sm:$0xff]  ;;  %v134_v32 = vld [vmem:[#allocation3 + $0x218] sm:$0xff]  ;;  %v2097_v34 = vpack.c.bf16 %v127_v26, %v123_v25  ;;  %v2161_v35 = vpack.c.bf16 %v129_v29, %v125_v27  ;;  %v131_v37 = vld [vmem:[#allocation3 + $0x200] sm:$0xff] }
  0x3d   :  { %2152 = vmatprep.subr.bf16.mxu1 %v2151_v4  ;;  %v138_v33 = vld [vmem:[#allocation3 + $0x238] sm:$0xff]  ;;  %v2099_v36 = vpack.c.bf16 %v136_v31, %v132_v30  ;;  %v135_v38 = vld [vmem:[#allocation3 + $0x220] sm:$0xff]  ;;  %v133_v39 = vld [vmem:[#allocation3 + $0x210] sm:$0xff] }
  0x3e   :  { %v2163_v40 = vpack.c.bf16 %v138_v33, %v134_v32  ;;  %v137_v41 = vld [vmem:[#allocation3 + $0x230] sm:$0xff]  ;;  %v140_v42 = vld [vmem:[#allocation3 + $0x248] sm:$0xff]  ;;  %v142_v44 = vld [vmem:[#allocation3 + $0x258] sm:$0xff]  ;;  %v2101_v46 = vpack.c.bf16 %v135_v38, %v131_v37 }
  0x3f   :  { %2090 = vmatpush1.bf16.msra.mxu0 %v2089_v10  ;;  %v144_v43 = vld [vmem:[#allocation3 + $0x268] sm:$0xff]  ;;  %v146_v45 = vld [vmem:[#allocation3 + $0x278] sm:$0xff]  ;;  %v2165_v47 = vpack.c.bf16 %v137_v41, %v133_v39  ;;  %v139_v49 = vld [vmem:[#allocation3 + $0x240] sm:$0xff] }
  0x40   :  { %2154 = vmatpush1.bf16.msra.mxu1 %v2153_v11  ;;  %2092 = vmatprep.subr.bf16.mxu0 %v2091_v12  ;;  %v2103_v48 = vpack.c.bf16 %v144_v43, %v140_v42  ;;  %v143_v50 = vld [vmem:[#allocation3 + $0x260] sm:$0xff]  ;;  %v141_v51 = vld [vmem:[#allocation3 + $0x250] sm:$0xff]  ;;  %v2167_v52 = vpack.c.bf16 %v146_v45, %v142_v44  ;;  %v148_v54 = vld [vmem:[#allocation3 + $0x288] sm:$0xff] }
  0x41   :  { %2156 = vmatprep.subr.bf16.mxu1 %v2155_v16  ;;  %v145_v53 = vld [vmem:[#allocation3 + $0x270] sm:$0xff]  ;;  %v152_v55 = vld [vmem:[#allocation3 + $0x2a8] sm:$0xff]  ;;  %v150_v56 = vld [vmem:[#allocation3 + $0x298] sm:$0xff]  ;;  %v2105_v58 = vpack.c.bf16 %v143_v50, %v139_v49 }
  0x42   :  { %v154_v57 = vld [vmem:[#allocation3 + $0x2b8] sm:$0xff]  ;;  %v2169_v59 = vpack.c.bf16 %v145_v53, %v141_v51  ;;  %v2107_v60 = vpack.c.bf16 %v152_v55, %v148_v54  ;;  %v147_v61 = vld [vmem:[#allocation3 + $0x280] sm:$0xff]  ;;  %v149_v63 = vld [vmem:[#allocation3 + $0x290] sm:$0xff] }
  0x43   :  { %2094 = vmatpush1.bf16.msra.mxu0 %v2093_v22  ;;  %v151_v62 = vld [vmem:[#allocation3 + $0x2a0] sm:$0xff]  ;;  %v2171_v0 = vpack.c.bf16 %v154_v57, %v150_v56  ;;  %v153_v1 = vld [vmem:[#allocation3 + $0x2b0] sm:$0xff]  ;;  %v156_v2 = vld [vmem:[#allocation3 + $0x2c8] sm:$0xff] }
  0x44   :  { %2158 = vmatpush1.bf16.msra.mxu1 %v2157_v23  ;;  %2096 = vmatprep.subr.bf16.mxu0 %v2095_v24  ;;  %v160_v3 = vld [vmem:[#allocation3 + $0x2e8] sm:$0xff]  ;;  %v158_v4 = vld [vmem:[#allocation3 + $0x2d8] sm:$0xff]  ;;  %v2109_v6 = vpack.c.bf16 %v151_v62, %v147_v61  ;;  %v155_v7 = vld [vmem:[#allocation3 + $0x2c0] sm:$0xff]  ;;  %v2173_v8 = vpack.c.bf16 %v153_v1, %v149_v63 }
  0x45   :  { %2160 = vmatprep.subr.bf16.mxu1 %v2159_v28  ;;  %v162_v5 = vld [vmem:[#allocation3 + $0x2f8] sm:$0xff]  ;;  %v2111_v9 = vpack.c.bf16 %v160_v3, %v156_v2  ;;  %v159_v10 = vld [vmem:[#allocation3 + $0x2e0] sm:$0xff]  ;;  %v157_v11 = vld [vmem:[#allocation3 + $0x2d0] sm:$0xff] }
  0x46   :  { %v161_v12 = vld [vmem:[#allocation3 + $0x2f0] sm:$0xff]  ;;  %v2175_v13 = vpack.c.bf16 %v162_v5, %v158_v4  ;;  %v164_v14 = vld [vmem:[#allocation3 + $0x308] sm:$0xff]  ;;  %v166_v17 = vld [vmem:[#allocation3 + $0x318] sm:$0xff]  ;;  %v2113_v19 = vpack.c.bf16 %v159_v10, %v155_v7 }
  0x47   :  { %2098 = vmatpush1.bf16.msra.mxu0 %v2097_v34  ;;  %v168_v15 = vld [vmem:[#allocation3 + $0x328] sm:$0xff]  ;;  %v170_v18 = vld [vmem:[#allocation3 + $0x338] sm:$0xff]  ;;  %v2177_v20 = vpack.c.bf16 %v161_v12, %v157_v11  ;;  %v163_v22 = vld [vmem:[#allocation3 + $0x300] sm:$0xff] }
  0x48   :  { %2162 = vmatpush1.bf16.msra.mxu1 %v2161_v35  ;;  %2100 = vmatprep.subr.bf16.mxu0 %v2099_v36  ;;  %v52_v16 = vld [vmem:[%s3656_s0 + $0x8] sm:$0xff]  ;;  %v2115_v21 = vpack.c.bf16 %v168_v15, %v164_v14  ;;  %v167_v23 = vld [vmem:[#allocation3 + $0x320] sm:$0xff]  ;;  %v165_v24 = vld [vmem:[#allocation3 + $0x310] sm:$0xff]  ;;  %v2179_v25 = vpack.c.bf16 %v170_v18, %v166_v17 }
  0x49   :  { %2164 = vmatprep.subr.bf16.mxu1 %v2163_v40  ;;  %281 = vmatprep.mubr.f32.mxu0 %v52_v16  ;;  %v169_v26 = vld [vmem:[#allocation3 + $0x330] sm:$0xff]  ;;  %v172_v27 = vld [vmem:[#allocation3 + $0x348] sm:$0xff]  ;;  %v174_v29 = vld [vmem:[#allocation3 + $0x358] sm:$0xff]  ;;  %v2117_v31 = vpack.c.bf16 %v167_v23, %v163_v22 }
  0x4a   :  { %394 = vmatprep.mubr.f32.mxu1 %v52_v16  ;;  %v176_v28 = vld [vmem:[#allocation3 + $0x368] sm:$0xff]  ;;  %v178_v30 = vld [vmem:[#allocation3 + $0x378] sm:$0xff]  ;;  %v2181_v32 = vpack.c.bf16 %v169_v26, %v165_v24  ;;  %v171_v34 = vld [vmem:[#allocation3 + $0x340] sm:$0xff] }
  0x4b   :  { %2102 = vmatpush1.bf16.msra.mxu0 %v2101_v46  ;;  %v2119_v33 = vpack.c.bf16 %v176_v28, %v172_v27  ;;  %v175_v35 = vld [vmem:[#allocation3 + $0x360] sm:$0xff]  ;;  %v173_v36 = vld [vmem:[#allocation3 + $0x350] sm:$0xff]  ;;  %v2183_v37 = vpack.c.bf16 %v178_v30, %v174_v29  ;;  %v180_v39 = vld [vmem:[#allocation3 + $0x388] sm:$0xff] }
  0x4c   :  { %2166 = vmatpush1.bf16.msra.mxu1 %v2165_v47  ;;  %2104 = vmatprep.subr.bf16.mxu0 %v2103_v48  ;;  %v177_v38 = vld [vmem:[#allocation3 + $0x370] sm:$0xff]  ;;  %v184_v40 = vld [vmem:[#allocation3 + $0x3a8] sm:$0xff]  ;;  %v182_v41 = vld [vmem:[#allocation3 + $0x398] sm:$0xff]  ;;  %v2121_v43 = vpack.c.bf16 %v175_v35, %v171_v34 }
  0x4d   :  { %2168 = vmatprep.subr.bf16.mxu1 %v2167_v52  ;;  %v186_v42 = vld [vmem:[#allocation3 + $0x3b8] sm:$0xff]  ;;  %v2185_v44 = vpack.c.bf16 %v177_v38, %v173_v36  ;;  %v2123_v45 = vpack.c.bf16 %v184_v40, %v180_v39  ;;  %v179_v46 = vld [vmem:[#allocation3 + $0x380] sm:$0xff]  ;;  %v181_v48 = vld [vmem:[#allocation3 + $0x390] sm:$0xff] }
  0x4e   :  { %v183_v47 = vld [vmem:[#allocation3 + $0x3a0] sm:$0xff]  ;;  %v2187_v49 = vpack.c.bf16 %v186_v42, %v182_v41  ;;  %v185_v50 = vld [vmem:[#allocation3 + $0x3b0] sm:$0xff]  ;;  %v188_v51 = vld [vmem:[#allocation3 + $0x3c8] sm:$0xff] }
  0x4f   :  { %2106 = vmatpush1.bf16.msra.mxu0 %v2105_v58  ;;  %v192_v52 = vld [vmem:[#allocation3 + $0x3e8] sm:$0xff]  ;;  %v190_v53 = vld [vmem:[#allocation3 + $0x3d8] sm:$0xff]  ;;  %v2125_v55 = vpack.c.bf16 %v183_v47, %v179_v46  ;;  %v2189_v56 = vpack.c.bf16 %v185_v50, %v181_v48  ;;  %v187_v58 = vld [vmem:[#allocation3 + $0x3c0] sm:$0xff] }
  0x50   :  { %2170 = vmatpush1.bf16.msra.mxu1 %v2169_v59  ;;  %2108 = vmatprep.subr.bf16.mxu0 %v2107_v60  ;;  %v194_v54 = vld [vmem:[#allocation3 + $0x3f8] sm:$0xff]  ;;  %v2127_v57 = vpack.c.bf16 %v192_v52, %v188_v51  ;;  %v191_v59 = vld [vmem:[#allocation3 + $0x3e0] sm:$0xff]  ;;  %v189_v60 = vld [vmem:[#allocation3 + $0x3d0] sm:$0xff] }
  0x51   :  { %2172 = vmatprep.subr.bf16.mxu1 %v2171_v0  ;;  %v2191_v61 = vpack.c.bf16 %v194_v54, %v190_v53  ;;  %v193_v62 = vld [vmem:[#allocation3 + $0x3f0] sm:$0xff]  ;;  %v483_v63 = vld [vmem:[%s3658_s2 + $0x8] sm:$0xff]  ;;  %v485_v1 = vld [vmem:[%s3658_s2 + $0x18] sm:$0xff]  ;;  %v2129_v3 = vpack.c.bf16 %v191_v59, %v187_v58 }
  0x52   :  { %v487_v0 = vld [vmem:[%s3658_s2 + $0x28] sm:$0xff]  ;;  %v489_v2 = vld [vmem:[%s3658_s2 + $0x38] sm:$0xff]  ;;  %v2193_v4 = vpack.c.bf16 %v193_v62, %v189_v60  ;;  %v486_v7 = vld [vmem:[%s3658_s2 + $0x20] sm:$0xff] }
  0x53   :  { %2110 = vmatpush1.bf16.msra.mxu0 %v2109_v6  ;;  %v3015_v5 = vpack.c.bf16 %v487_v0, %v483_v63  ;;  %v482_v6 = vld [vmem:[%s3658_s2] sm:$0xff]  ;;  %v488_v10 = vld [vmem:[%s3658_s2 + $0x30] sm:$0xff]  ;;  %v491_v11 = vld [vmem:[%s3658_s2 + $0x48] sm:$0xff] }
  0x54   :  { %2174 = vmatpush1.bf16.msra.mxu1 %v2173_v8  ;;  %2112 = vmatprep.subr.bf16.mxu0 %v2111_v9  ;;  %v3023_v8 = vpack.c.bf16 %v489_v2, %v485_v1  ;;  %v484_v9 = vld [vmem:[%s3658_s2 + $0x10] sm:$0xff]  ;;  %v495_v12 = vld [vmem:[%s3658_s2 + $0x68] sm:$0xff]  ;;  %v3040_v14 = vpack.c.bf16 %v486_v7, %v482_v6  ;;  %v493_v15 = vld [vmem:[%s3658_s2 + $0x58] sm:$0xff] }
  0x55   :  { %2176 = vmatprep.subr.bf16.mxu1 %v2175_v13  ;;  %v51_v13 = vld [vmem:[%s3656_s0] sm:$0xff]  ;;  %v497_v16 = vld [vmem:[%s3658_s2 + $0x78] sm:$0xff]  ;;  %v3049_v17 = vpack.c.bf16 %v488_v10, %v484_v9  ;;  %v492_v22 = vld [vmem:[%s3658_s2 + $0x50] sm:$0xff] }
  0x56   :  { %v490_v18 = vld [vmem:[%s3658_s2 + $0x40] sm:$0xff]  ;;  %v496_v23 = vld [vmem:[%s3658_s2 + $0x70] sm:$0xff]  ;;  %v3069_v24 = vpack.c.bf16 %v497_v16, %v493_v15  ;;  %v503_v26 = vld [vmem:[%s3658_s2 + $0xa8] sm:$0xff] }
  0x57   :  { %2114 = vmatpush1.bf16.msra.mxu0 %v2113_v19  ;;  %v494_v19 = vld [vmem:[%s3658_s2 + $0x60] sm:$0xff]  ;;  %v53_v27 = vld [vmem:[%s3656_s0 + $0x10] sm:$0xff]  ;;  %v501_v29 = vld [vmem:[%s3658_s2 + $0x98] sm:$0xff] }
  0x58   :  { %2178 = vmatpush1.bf16.msra.mxu1 %v2177_v20  ;;  %2116 = vmatprep.subr.bf16.mxu0 %v2115_v21  ;;  %v54_v20 = vld [vmem:[%s3656_s0 + $0x18] sm:$0xff]  ;;  %v3061_v21 = vpack.c.bf16 %v495_v12, %v491_v11  ;;  %v3081_v28 = vpack.c.bf16 %v494_v19, %v490_v18  ;;  %v56_v34 = vld [vmem:[%s3656_s0 + $0x28] sm:$0xff]  ;;  %v500_v36 = vld [vmem:[%s3658_s2 + $0x90] sm:$0xff] }
  0x59   :  { %2180 = vmatprep.subr.bf16.mxu1 %v2179_v25  ;;  %v499_v25 = vld [vmem:[%s3658_s2 + $0x88] sm:$0xff]  ;;  %v505_v30 = vld [vmem:[%s3658_s2 + $0xb8] sm:$0xff]  ;;  %v55_v41 = vld [vmem:[%s3656_s0 + $0x20] sm:$0xff] }
  0x5a   :  { %v3102_v35 = vpack.c.bf16 %v503_v26, %v499_v25  ;;  %v3111_v38 = vpack.c.bf16 %v505_v30, %v501_v29  ;;  %v507_v39 = vld [vmem:[%s3658_s2 + $0xc8] sm:$0xff]  ;;  %v506_v46 = vld [vmem:[%s3658_s2 + $0xc0] sm:$0xff]  ;;  %v58_v48 = vld [vmem:[%s3656_s0 + $0x38] sm:$0xff] }
  0x5b   :  { %2118 = vmatpush1.bf16.msra.mxu0 %v2117_v31  ;;  %v3090_v31 = vpack.c.bf16 %v496_v23, %v492_v22  ;;  %v511_v40 = vld [vmem:[%s3658_s2 + $0xe8] sm:$0xff]  ;;  %v510_v47 = vld [vmem:[%s3658_s2 + $0xe0] sm:$0xff]  ;;  %v508_v50 = vld [vmem:[%s3658_s2 + $0xd0] sm:$0xff] }
  0x5c   :  { %2182 = vmatpush1.bf16.msra.mxu1 %v2181_v32  ;;  %2120 = vmatprep.subr.bf16.mxu0 %v2119_v33  ;;  %v498_v32 = vld [vmem:[%s3658_s2 + $0x80] sm:$0xff]  ;;  %v512_v51 = vld [vmem:[%s3658_s2 + $0xf0] sm:$0xff]  ;;  %v515_v53 = vld [vmem:[%s3658_s2 + $0x108] sm:$0xff] }
  0x5d   :  { %2184 = vmatprep.subr.bf16.mxu1 %v2183_v37  ;;  %v502_v33 = vld [vmem:[%s3658_s2 + $0xa0] sm:$0xff]  ;;  %v504_v37 = vld [vmem:[%s3658_s2 + $0xb0] sm:$0xff]  ;;  %v519_v54 = vld [vmem:[%s3658_s2 + $0x128] sm:$0xff]  ;;  %v3174_v59 = vpack.c.bf16 %v512_v51, %v508_v50 }
  0x5e   :  { %v3123_v42 = vpack.c.bf16 %v502_v33, %v498_v32  ;;  %v521_v58 = vld [vmem:[%s3658_s2 + $0x138] sm:$0xff]  ;;  %v514_v60 = vld [vmem:[%s3658_s2 + $0x100] sm:$0xff]  ;;  %v60_v62 = vld [vmem:[%s3656_s0 + $0x48] sm:$0xff]  ;;  %v3186_v63 = vpack.c.bf16 %v519_v54, %v515_v53 }
  0x5f   :  { %2122 = vmatpush1.bf16.msra.mxu0 %v2121_v43  ;;  %v509_v43 = vld [vmem:[%s3658_s2 + $0xd8] sm:$0xff]  ;;  %v516_v0 = vld [vmem:[%s3658_s2 + $0x110] sm:$0xff]  ;;  %v59_v6 = vld [vmem:[%s3656_s0 + $0x40] sm:$0xff] }
  0x60   :  { %2186 = vmatpush1.bf16.msra.mxu1 %v2185_v44  ;;  %2124 = vmatprep.subr.bf16.mxu0 %v2123_v45  ;;  %v513_v44 = vld [vmem:[%s3658_s2 + $0xf8] sm:$0xff]  ;;  %v3132_v45 = vpack.c.bf16 %v504_v37, %v500_v36  ;;  %v520_v1 = vld [vmem:[%s3658_s2 + $0x130] sm:$0xff]  ;;  %v522_v12 = vld [vmem:[%s3658_s2 + $0x140] sm:$0xff] }
  0x61   :  { %2188 = vmatprep.subr.bf16.mxu1 %v2187_v49  ;;  %v3144_v49 = vpack.c.bf16 %v511_v40, %v507_v39  ;;  %v3153_v52 = vpack.c.bf16 %v513_v44, %v509_v43  ;;  %v525_v9 = vld [vmem:[%s3658_s2 + $0x158] sm:$0xff]  ;;  %v3216_v11 = vpack.c.bf16 %v520_v1, %v516_v0  ;;  %v524_v18 = vld [vmem:[%s3658_s2 + $0x150] sm:$0xff]  ;;  %v531_v22 = vld [vmem:[%s3658_s2 + $0x188] sm:$0xff]  ;;  %v2938_v1 = vmov 0.0  }
  0x62   :  { %v529_v10 = vld [vmem:[%s3658_s2 + $0x178] sm:$0xff]  ;;  %v528_v19 = vld [vmem:[%s3658_s2 + $0x170] sm:$0xff]  ;;  %v535_v23 = vld [vmem:[%s3658_s2 + $0x1a8] sm:$0xff] }
  0x63   :  { %2126 = vmatpush1.bf16.msra.mxu0 %v2125_v55  ;;  %v57_v55 = vld [vmem:[%s3656_s0 + $0x30] sm:$0xff]  ;;  %v62_v15 = vld [vmem:[%s3656_s0 + $0x58] sm:$0xff]  ;;  %v3258_v30 = vpack.c.bf16 %v528_v19, %v524_v18  ;;  %v530_v32 = vld [vmem:[%s3658_s2 + $0x180] sm:$0xff]  ;;  %v3270_v36 = vpack.c.bf16 %v535_v23, %v531_v22 }
  0x64   :  { %2190 = vmatpush1.bf16.msra.mxu1 %v2189_v56  ;;  %2128 = vmatprep.subr.bf16.mxu0 %v2127_v57  ;;  %v3165_v56 = vpack.c.bf16 %v510_v47, %v506_v46  ;;  %v517_v57 = vld [vmem:[%s3658_s2 + $0x118] sm:$0xff]  ;;  %v61_v25 = vld [vmem:[%s3656_s0 + $0x50] sm:$0xff]  ;;  %v534_v33 = vld [vmem:[%s3658_s2 + $0x1a0] sm:$0xff] }
  0x65   :  { %2192 = vmatprep.subr.bf16.mxu1 %v2191_v61  ;;  %v518_v61 = vld [vmem:[%s3658_s2 + $0x120] sm:$0xff]  ;;  %v3195_v2 = vpack.c.bf16 %v521_v58, %v517_v57  ;;  %v537_v29 = vld [vmem:[%s3658_s2 + $0x1b8] sm:$0xff]  ;;  %v532_v37 = vld [vmem:[%s3658_s2 + $0x190] sm:$0xff]  ;;  %v3291_v46 = vpack.c.bf16 %v534_v33, %v530_v32 }
  0x66   :  { %v3207_v7 = vpack.c.bf16 %v518_v61, %v514_v60  ;;  %v536_v39 = vld [vmem:[%s3658_s2 + $0x1b0] sm:$0xff]  ;;  %v543_v43 = vld [vmem:[%s3658_s2 + $0x1e8] sm:$0xff]  ;;  %v63_v44 = vld [vmem:[%s3656_s0 + $0x60] sm:$0xff] }
  0x67   :  { %2130 = vmatpush1.bf16.msra.mxu0 %v2129_v3  ;;  %v523_v3 = vld [vmem:[%s3658_s2 + $0x148] sm:$0xff]  ;;  %v541_v47 = vld [vmem:[%s3658_s2 + $0x1d8] sm:$0xff]  ;;  %v3300_v50 = vpack.c.bf16 %v536_v39, %v532_v37  ;;  %v538_v51 = vld [vmem:[%s3658_s2 + $0x1c0] sm:$0xff] }
  0x68   :  { %2194 = vmatpush1.bf16.msra.mxu1 %v2193_v4  ;;  %2196 = vmatprep.subr.bf16.mxu0 %v3015_v5  ;;  %v527_v4 = vld [vmem:[%s3658_s2 + $0x168] sm:$0xff]  ;;  %v542_v53 = vld [vmem:[%s3658_s2 + $0x1e0] sm:$0xff]  ;;  %v66_v54 = vld [vmem:[%s3656_s0 + $0x78] sm:$0xff] }
  0x69   :  { %2228 = vmatprep.subr.bf16.mxu1 %v3023_v8  ;;  %v3228_v16 = vpack.c.bf16 %v527_v4, %v523_v3  ;;  %v540_v57 = vld [vmem:[%s3658_s2 + $0x1d0] sm:$0xff]  ;;  %v197_v3 = vlaneseq }
  0x6a   :  { %282 = vmatmul.mubr.f32.vlgmr.msra.gmra.mrb[0].mxu0 %v51_v13  ;;  %v544_v58 = vld [vmem:[%s3658_s2 + $0x1f0] sm:$0xff] }
  0x6b   :  { %395 = vmatmul.mubr.f32.vlgmr.msra.gmra.mrb[0].mxu1 %v51_v13  ;;  %2198 = vmatpush1.bf16.msra.mxu0 %v3040_v14  ;;  %v526_v13 = vld [vmem:[%s3658_s2 + $0x160] sm:$0xff]  ;;  %v65_v61 = vld [vmem:[%s3656_s0 + $0x70] sm:$0xff]  ;;  %v3330_v0 = vpack.c.bf16 %v544_v58, %v540_v57  ;;  %v198_v4 = vshrl.u32 %v197_v3, 7 }
  0x6c   :  { %2230 = vmatpush1.bf16.msra.mxu1 %v3049_v17  ;;  %287 = vmatprep.mubr.f32.mxu0 %v54_v20  ;;  %v3249_v26 = vpack.c.bf16 %v526_v13, %v522_v12 }
  0x6d   :  { %400 = vmatprep.mubr.f32.mxu1 %v54_v20  ;;  %2200 = vmatprep.subr.bf16.mxu0 %v3061_v21  ;;  %v3237_v20 = vpack.c.bf16 %v529_v10, %v525_v9  ;;  %v195_v9 = vld [vmem:[%s3659_s3] sm:$0xf]  ;;  %v203_v10 = vsub.s32 1, %v198_v4  ;;  %v211_v13 = vsub.s32 3, %v198_v4 }
  0x6e   :  { %288 = vmatmul.mubr.f32.gmra.mrb[2].mxu0 %v53_v27  ;;  %2232 = vmatprep.subr.bf16.mxu1 %v3069_v24 }
  0x6f   :  { %401 = vmatmul.mubr.f32.gmra.mrb[2].mxu1 %v53_v27  ;;  %2202 = vmatpush1.bf16.msra.mxu0 %v3081_v28  ;;  %v533_v27 = vld [vmem:[%s3658_s2 + $0x198] sm:$0xff] }
  0x70   :  { %2234 = vmatpush1.bf16.msra.mxu1 %v3090_v31  ;;  %293 = vmatprep.mubr.f32.mxu0 %v56_v34  ;;  %v3279_v40 = vpack.c.bf16 %v537_v29, %v533_v27  ;;  %v207_v27 = vsub.s32 2, %v198_v4 }
  0x71   :  { %406 = vmatprep.mubr.f32.mxu1 %v56_v34  ;;  %2204 = vmatprep.subr.bf16.mxu0 %v3102_v35  ;;  %v64_v34 = vld [vmem:[%s3656_s0 + $0x68] sm:$0xff] }
  0x72   :  { %294 = vmatmul.mubr.f32.gmra.mrb[4].mxu0 %v55_v41  ;;  %2236 = vmatprep.subr.bf16.mxu1 %v3111_v38  ;;  %v3388_v39 = vrot.slane %v195_v9, %v207_v27 }
  0x73   :  { %407 = vmatmul.mubr.f32.gmra.mrb[4].mxu1 %v55_v41  ;;  %2206 = vmatpush1.bf16.msra.mxu0 %v3123_v42  ;;  %v539_v41 = vld [vmem:[%s3658_s2 + $0x1c8] sm:$0xff] }
  0x74   :  { %2238 = vmatpush1.bf16.msra.mxu1 %v3132_v45  ;;  %299 = vmatprep.mubr.f32.mxu0 %v58_v48 }
  0x75   :  { %412 = vmatprep.mubr.f32.mxu1 %v58_v48  ;;  %2208 = vmatprep.subr.bf16.mxu0 %v3144_v49  ;;  %v545_v48 = vld [vmem:[%s3658_s2 + $0x1f8] sm:$0xff] }
  0x76   :  { %300 = vmatmul.mubr.f32.gmra.mrb[6].mxu0 %v57_v55  ;;  %2240 = vmatprep.subr.bf16.mxu1 %v3153_v52  ;;  %v3321_v60 = vpack.c.bf16 %v545_v48, %v541_v47 }
  0x77   :  { %413 = vmatmul.mubr.f32.gmra.mrb[6].mxu1 %v57_v55  ;;  %2210 = vmatpush1.bf16.msra.mxu0 %v3165_v56  ;;  %v3312_v55 = vpack.c.bf16 %v543_v43, %v539_v41 }
  0x78   :  { %2242 = vmatpush1.bf16.msra.mxu1 %v3174_v59  ;;  %305 = vmatprep.mubr.f32.mxu0 %v60_v62 }
  0x79   :  { %418 = vmatprep.mubr.f32.mxu1 %v60_v62  ;;  %2212 = vmatprep.subr.bf16.mxu0 %v3186_v63  ;;  %v3327_v62 = vpack.c.bf16 %v542_v53, %v538_v51 }
  0x7a   :  { %306 = vmatmul.mubr.f32.gmra.mrb[8].mxu0 %v59_v6  ;;  %2244 = vmatprep.subr.bf16.mxu1 %v3195_v2 }
  0x7b   :  { %419 = vmatmul.mubr.f32.gmra.mrb[8].mxu1 %v59_v6  ;;  %2214 = vmatpush1.bf16.msra.mxu0 %v3207_v7  ;;  %v199_v6 = vsub.s32 0, %v198_v4 }
  0x7c   :  { %2246 = vmatpush1.bf16.msra.mxu1 %v3216_v11  ;;  %311 = vmatprep.mubr.f32.mxu0 %v62_v15 }
  0x7d   :  { %424 = vmatprep.mubr.f32.mxu1 %v62_v15  ;;  %2216 = vmatprep.subr.bf16.mxu0 %v3228_v16  ;;  %v3379_v12 = vrot.slane %v195_v9, %v199_v6  ;;  %v3381_v15 = vrot.slane %v195_v9, %v203_v10 }
  0x7e   :  { %312 = vmatmul.mubr.f32.gmra.mrb[10].mxu0 %v61_v25  ;;  %2248 = vmatprep.subr.bf16.mxu1 %v3237_v20 }
  0x7f   :  { %425 = vmatmul.mubr.f32.gmra.mrb[10].mxu1 %v61_v25  ;;  %2218 = vmatpush1.bf16.msra.mxu0 %v3249_v26  ;;  %v3384_v25 = vrot.slane %v195_v9, %v211_v13 }
  0x80   :  { %2250 = vmatpush1.bf16.msra.mxu1 %v3258_v30  ;;  %317 = vmatprep.mubr.f32.mxu0 %v64_v34 }
  0x81   :  { %430 = vmatprep.mubr.f32.mxu1 %v64_v34  ;;  %2220 = vmatprep.subr.bf16.mxu0 %v3270_v36 }
  0x82   :  { %318 = vmatmul.mubr.f32.gmra.mrb[12].mxu0 %v63_v44  ;;  %2252 = vmatprep.subr.bf16.mxu1 %v3279_v40 }
  0x83   :  { %431 = vmatmul.mubr.f32.gmra.mrb[12].mxu1 %v63_v44  ;;  %2222 = vmatpush1.bf16.msra.mxu0 %v3291_v46 }
  0x84   :  { %2254 = vmatpush1.bf16.msra.mxu1 %v3300_v50  ;;  %323 = vmatprep.mubr.f32.mxu0 %v66_v54 }
  0x85   :  { %436 = vmatprep.mubr.f32.mxu1 %v66_v54  ;;  %2224 = vmatprep.subr.bf16.mxu0 %v3312_v55 }
  0x86   :  { %324 = vmatmul.mubr.f32.gmra.mrb[14].mxu0 %v65_v61  ;;  %2256 = vmatprep.subr.bf16.mxu1 %v3321_v60 }
  0x87   :  { %437 = vmatmul.mubr.f32.gmra.mrb[14].mxu1 %v65_v61  ;;  %2226 = vmatpush1.bf16.msra.mxu0 %v3327_v62 }
  0x88   :  { %2258 = vmatpush1.bf16.msra.mxu1 %v3330_v0  ;;  %610 = vmatprep.mubr.f32.mxu0 %v2938_v1 }
  0x89   :  { %681 = vmatprep.mubr.f32.mxu1 %v2938_v1  ;;  %2260 = vmatprep.subr.bf16.mxu0 %v3015_v5 }
  0x8a   :  { %611 = vmatmul.mubr.f32.vlgmr.msra.gmra.mrb[0].mxu0 %v2938_v1  ;;  %2292 = vmatprep.subr.bf16.mxu1 %v3023_v8 }
  0x8b   :  { %682 = vmatmul.mubr.f32.vlgmr.msra.gmra.mrb[0].mxu1 %v2938_v1  ;;  %2262 = vmatpush1.bf16.msra.mxu0 %v3040_v14 }
  0x8c   :  { %2294 = vmatpush1.bf16.msra.mxu1 %v3049_v17  ;;  %2264 = vmatprep.subr.bf16.mxu0 %v3061_v21 }
  0x8d   :  { %2296 = vmatprep.subr.bf16.mxu1 %v3069_v24  ;;  %781 = vmatprep.mubr.f32.mxu0 %v2938_v1 }
  0x8e   :  { %852 = vmatprep.mubr.f32.mxu1 %v2938_v1 }
  0x8f   :  { %2266 = vmatpush1.bf16.msra.mxu0 %v3081_v28 }
  0x90   :  { %2298 = vmatpush1.bf16.msra.mxu1 %v3090_v31  ;;  %2268 = vmatprep.subr.bf16.mxu0 %v3102_v35 }
  0x91   :  { %2300 = vmatprep.subr.bf16.mxu1 %v3111_v38 }
  0x93   :  { %2270 = vmatpush1.bf16.msra.mxu0 %v3123_v42 }
  0x94   :  { %2302 = vmatpush1.bf16.msra.mxu1 %v3132_v45  ;;  %2272 = vmatprep.subr.bf16.mxu0 %v3144_v49 }
  0x95   :  { %2304 = vmatprep.subr.bf16.mxu1 %v3153_v52 }
  0x97   :  { %2274 = vmatpush1.bf16.msra.mxu0 %v3165_v56 }
  0x98   :  { %2306 = vmatpush1.bf16.msra.mxu1 %v3174_v59  ;;  %2276 = vmatprep.subr.bf16.mxu0 %v3186_v63 }
  0x99   :  { %2308 = vmatprep.subr.bf16.mxu1 %v3195_v2 }
  0x9b   :  { %2278 = vmatpush1.bf16.msra.mxu0 %v3207_v7 }
  0x9c   :  { %2310 = vmatpush1.bf16.msra.mxu1 %v3216_v11  ;;  %2280 = vmatprep.subr.bf16.mxu0 %v3228_v16 }
  0x9d   :  { %2312 = vmatprep.subr.bf16.mxu1 %v3237_v20 }
  0x9f   :  { %2282 = vmatpush1.bf16.msra.mxu0 %v3249_v26 }
  0xa0   :  { %2314 = vmatpush1.bf16.msra.mxu1 %v3258_v30  ;;  %2284 = vmatprep.subr.bf16.mxu0 %v3270_v36 }
  0xa1   :  { %2316 = vmatprep.subr.bf16.mxu1 %v3279_v40 }
  0xa3   :  { %2286 = vmatpush1.bf16.msra.mxu0 %v3291_v46 }
  0xa4   :  { %2318 = vmatpush1.bf16.msra.mxu1 %v3300_v50  ;;  %2288 = vmatprep.subr.bf16.mxu0 %v3312_v55 }
  0xa5   :  { %2320 = vmatprep.subr.bf16.mxu1 %v3321_v60 }
  0xa7   :  { %2290 = vmatpush1.bf16.msra.mxu0 %v3327_v62 }
  0xa8   :  { %2322 = vmatpush1.bf16.msra.mxu1 %v3330_v0  ;;  %2324 = vmatprep.subr.bf16.mxu0 %v3015_v5 }
  0xa9   :  { %2356 = vmatprep.subr.bf16.mxu1 %v3023_v8 }
 0x15d   :  { %v612_v18 = vpop.f32.mrb[0].mxu0 }
 0x15e   :  { %v2731_v19 = vadd.f32 %v612_v18, %v3379_v12  ;;  %v683_v22 = vpop.f32.mrb[0].mxu1  ;;  %v614_v23 = vpop.f32.mrb[1].mxu0 }
 0x15f   :  { %v2732_v29 = vadd.f32 %v614_v23, %v3381_v15  ;;  %v685_v32 = vpop.f32.mrb[1].mxu1  ;;  %v2747_v41 = vadd.f32 %v683_v22, %v3388_v39 }
 0x160   :  { %v692_v33 = vmul.f32 0.5, %v2731_v19  ;;  %v2748_v37 = vadd.f32 %v685_v32, %v3384_v25 }
 0x161   :  { %v693_v34 = vmul.f32 0.5, %v2732_v29  ;;  %v694_v43 = vmul.f32 0.5, %v2747_v41 }
 0x162   :  { %2804 = vtanh.f32 %v692_v33 }
 0x163   :  { %2806 = vtanh.f32 %v693_v34 }
 0x164   :  { %2808 = vtanh.f32 %v2748_v37 }
 0x165   :  { %2810 = vtanh.f32 %v694_v43 }
 0x16c   :  { %v2805_v44 = vpop.eup %2804 }
 0x16d   :  { %v698_v47 = vmul.f32 0.5, %v2805_v44  ;;  %v2807_v48 = vpop.eup %2806 }
 0x16e   :  { %v699_v53 = vmul.f32 0.5, %v2807_v48  ;;  %v2809_v54 = vpop.eup %2808 }
 0x16f   :  { %v701_v51 = vadd.f32 0.5, %v698_v47  ;;  %v2811_v4 = vpop.eup %2810 }
 0x170   :  { %v702_v57 = vadd.f32 0.5, %v699_v53  ;;  %v700_v6 = vmul.f32 0.5, %v2811_v4 }
 0x171   :  { %v706_v58 = vmul.f32 %v2809_v54, %v701_v51 }
 0x172   :  { %v705_v61 = vmul.f32 0.0, %v702_v57  ;;  %v703_v9 = vadd.f32 0.5, %v700_v6 }
 0x174   :  { %v3391_v3 = vadd.f32 %v706_v58, %v705_v61 }
 0x176   :  { %2812 = vtanh.f32 %v3391_v3 }
 0x180   :  { %v2813_v10 = vpop.eup %2812 }
 0x181   :  { %v709_v13 = vmul.f32 %v2813_v10, %v703_v9 }
 0x183   :  { %782 = vmatmul.mubr.f32.vlgmr.msra.gmra.mrb[2].mxu0 %v709_v13  ;;  %853 = vmatmul.mubr.f32.vlgmr.msra.gmra.mrb[2].mxu1 %v709_v13 }
 0x184   :  { %2326 = vmatpush1.bf16.msra.mxu0 %v3040_v14  ;;  %2358 = vmatpush1.bf16.msra.mxu1 %v3049_v17 }
 0x185   :  { %2328 = vmatprep.subr.bf16.mxu0 %v3061_v21  ;;  %2360 = vmatprep.subr.bf16.mxu1 %v3069_v24 }
 0x186   :  { %952 = vmatprep.mubr.f32.mxu0 %v2938_v1  ;;  %1023 = vmatprep.mubr.f32.mxu1 %v2938_v1 }
 0x188   :  { %2330 = vmatpush1.bf16.msra.mxu0 %v3081_v28  ;;  %2362 = vmatpush1.bf16.msra.mxu1 %v3090_v31 }
 0x189   :  { %2332 = vmatprep.subr.bf16.mxu0 %v3102_v35  ;;  %2364 = vmatprep.subr.bf16.mxu1 %v3111_v38 }
 0x18c   :  { %2334 = vmatpush1.bf16.msra.mxu0 %v3123_v42  ;;  %2366 = vmatpush1.bf16.msra.mxu1 %v3132_v45 }
 0x18d   :  { %2336 = vmatprep.subr.bf16.mxu0 %v3144_v49  ;;  %2368 = vmatprep.subr.bf16.mxu1 %v3153_v52 }
 0x190   :  { %2338 = vmatpush1.bf16.msra.mxu0 %v3165_v56  ;;  %2370 = vmatpush1.bf16.msra.mxu1 %v3174_v59 }
 0x191   :  { %2340 = vmatprep.subr.bf16.mxu0 %v3186_v63  ;;  %2372 = vmatprep.subr.bf16.mxu1 %v3195_v2 }
 0x194   :  { %2342 = vmatpush1.bf16.msra.mxu0 %v3207_v7  ;;  %2374 = vmatpush1.bf16.msra.mxu1 %v3216_v11 }
 0x195   :  { %2344 = vmatprep.subr.bf16.mxu0 %v3228_v16  ;;  %2376 = vmatprep.subr.bf16.mxu1 %v3237_v20 }
 0x198   :  { %2346 = vmatpush1.bf16.msra.mxu0 %v3249_v26  ;;  %2378 = vmatpush1.bf16.msra.mxu1 %v3258_v30 }
 0x199   :  { %2348 = vmatprep.subr.bf16.mxu0 %v3270_v36  ;;  %2380 = vmatprep.subr.bf16.mxu1 %v3279_v40 }
 0x19c   :  { %2350 = vmatpush1.bf16.msra.mxu0 %v3291_v46  ;;  %2382 = vmatpush1.bf16.msra.mxu1 %v3300_v50 }
 0x19d   :  { %2352 = vmatprep.subr.bf16.mxu0 %v3312_v55  ;;  %2384 = vmatprep.subr.bf16.mxu1 %v3321_v60 }
 0x1a0   :  { %2354 = vmatpush1.bf16.msra.mxu0 %v3327_v62  ;;  %2386 = vmatpush1.bf16.msra.mxu1 %v3330_v0 }
 0x1a1   :  { %2388 = vmatprep.subr.bf16.mxu0 %v3015_v5  ;;  %2420 = vmatprep.subr.bf16.mxu1 %v3023_v8 }
 0x256   :  { %v783_v18 = vpop.f32.mrb[2].mxu0  ;;  %v854_v19 = vpop.f32.mrb[2].mxu1 }
 0x257   :  { %v2733_v22 = vadd.f32 %v783_v18, %v3379_v12  ;;  %v785_v23 = vpop.f32.mrb[3].mxu0  ;;  %v856_v27 = vpop.f32.mrb[3].mxu1  ;;  %v2749_v37 = vadd.f32 %v854_v19, %v3388_v39 }
 0x258   :  { %v2734_v29 = vadd.f32 %v785_v23, %v3381_v15  ;;  %v2750_v34 = vadd.f32 %v856_v27, %v3384_v25 }
 0x259   :  { %v863_v32 = vmul.f32 0.5, %v2733_v22  ;;  %v865_v41 = vmul.f32 0.5, %v2749_v37 }
 0x25a   :  { %v864_v33 = vmul.f32 0.5, %v2734_v29 }
 0x25b   :  { %2814 = vtanh.f32 %v863_v32 }
 0x25c   :  { %2816 = vtanh.f32 %v864_v33 }
 0x25d   :  { %2818 = vtanh.f32 %v2750_v34 }
 0x25e   :  { %2820 = vtanh.f32 %v865_v41 }
 0x265   :  { %v2815_v43 = vpop.eup %2814 }
 0x266   :  { %v869_v44 = vmul.f32 0.5, %v2815_v43  ;;  %v2817_v47 = vpop.eup %2816 }
 0x267   :  { %v870_v51 = vmul.f32 0.5, %v2817_v47  ;;  %v2819_v53 = vpop.eup %2818 }
 0x268   :  { %v872_v48 = vadd.f32 0.5, %v869_v44  ;;  %v2821_v4 = vpop.eup %2820 }
 0x269   :  { %v873_v54 = vadd.f32 0.5, %v870_v51  ;;  %v871_v6 = vmul.f32 0.5, %v2821_v4 }
 0x26a   :  { %v877_v57 = vmul.f32 %v2819_v53, %v872_v48 }
 0x26b   :  { %v876_v58 = vmul.f32 %v873_v54, %v3391_v3  ;;  %v874_v9 = vadd.f32 0.5, %v871_v6 }
 0x26d   :  { %v3433_v61 = vadd.f32 %v877_v57, %v876_v58 }
 0x26f   :  { %2822 = vtanh.f32 %v3433_v61 }
 0x279   :  { %v2823_v10 = vpop.eup %2822 }
 0x27a   :  { %v880_v13 = vmul.f32 %v2823_v10, %v874_v9 }
 0x27c   :  { %953 = vmatmul.mubr.f32.vlgmr.msra.gmra.mrb[4].mxu0 %v880_v13  ;;  %1024 = vmatmul.mubr.f32.vlgmr.msra.gmra.mrb[4].mxu1 %v880_v13 }
 0x27d   :  { %2390 = vmatpush1.bf16.msra.mxu0 %v3040_v14  ;;  %2422 = vmatpush1.bf16.msra.mxu1 %v3049_v17 }
 0x27e   :  { %2392 = vmatprep.subr.bf16.mxu0 %v3061_v21  ;;  %2424 = vmatprep.subr.bf16.mxu1 %v3069_v24 }
 0x27f   :  { %1123 = vmatprep.mubr.f32.mxu0 %v2938_v1  ;;  %1194 = vmatprep.mubr.f32.mxu1 %v2938_v1 }
 0x281   :  { %2394 = vmatpush1.bf16.msra.mxu0 %v3081_v28  ;;  %2426 = vmatpush1.bf16.msra.mxu1 %v3090_v31 }
 0x282   :  { %2396 = vmatprep.subr.bf16.mxu0 %v3102_v35  ;;  %2428 = vmatprep.subr.bf16.mxu1 %v3111_v38 }
 0x285   :  { %2398 = vmatpush1.bf16.msra.mxu0 %v3123_v42  ;;  %2430 = vmatpush1.bf16.msra.mxu1 %v3132_v45 }
 0x286   :  { %2400 = vmatprep.subr.bf16.mxu0 %v3144_v49  ;;  %2432 = vmatprep.subr.bf16.mxu1 %v3153_v52 }
 0x289   :  { %2402 = vmatpush1.bf16.msra.mxu0 %v3165_v56  ;;  %2434 = vmatpush1.bf16.msra.mxu1 %v3174_v59 }
 0x28a   :  { %2404 = vmatprep.subr.bf16.mxu0 %v3186_v63  ;;  %2436 = vmatprep.subr.bf16.mxu1 %v3195_v2 }
 0x28d   :  { %2406 = vmatpush1.bf16.msra.mxu0 %v3207_v7  ;;  %2438 = vmatpush1.bf16.msra.mxu1 %v3216_v11 }
 0x28e   :  { %2408 = vmatprep.subr.bf16.mxu0 %v3228_v16  ;;  %2440 = vmatprep.subr.bf16.mxu1 %v3237_v20 }
 0x291   :  { %2410 = vmatpush1.bf16.msra.mxu0 %v3249_v26  ;;  %2442 = vmatpush1.bf16.msra.mxu1 %v3258_v30 }
 0x292   :  { %2412 = vmatprep.subr.bf16.mxu0 %v3270_v36  ;;  %2444 = vmatprep.subr.bf16.mxu1 %v3279_v40 }
 0x295   :  { %2414 = vmatpush1.bf16.msra.mxu0 %v3291_v46  ;;  %2446 = vmatpush1.bf16.msra.mxu1 %v3300_v50 }
 0x296   :  { %2416 = vmatprep.subr.bf16.mxu0 %v3312_v55  ;;  %2448 = vmatprep.subr.bf16.mxu1 %v3321_v60 }
 0x299   :  { %2418 = vmatpush1.bf16.msra.mxu0 %v3327_v62  ;;  %2450 = vmatpush1.bf16.msra.mxu1 %v3330_v0 }
 0x29a   :  { %2452 = vmatprep.subr.bf16.mxu0 %v3015_v5  ;;  %2484 = vmatprep.subr.bf16.mxu1 %v3023_v8 }
 0x34f   :  { %v954_v3 = vpop.f32.mrb[4].mxu0  ;;  %v1025_v18 = vpop.f32.mrb[4].mxu1 }
 0x350   :  { %v2735_v19 = vadd.f32 %v954_v3, %v3379_v12  ;;  %v956_v22 = vpop.f32.mrb[5].mxu0  ;;  %v1027_v23 = vpop.f32.mrb[5].mxu1  ;;  %v2751_v34 = vadd.f32 %v1025_v18, %v3388_v39 }
 0x351   :  { %v2736_v27 = vadd.f32 %v956_v22, %v3381_v15  ;;  %v2752_v33 = vadd.f32 %v1027_v23, %v3384_v25 }
 0x352   :  { %v1034_v29 = vmul.f32 0.5, %v2735_v19  ;;  %v1036_v37 = vmul.f32 0.5, %v2751_v34 }
 0x353   :  { %v1035_v32 = vmul.f32 0.5, %v2736_v27 }
 0x354   :  { %2824 = vtanh.f32 %v1034_v29 }
 0x355   :  { %2826 = vtanh.f32 %v1035_v32 }
 0x356   :  { %2828 = vtanh.f32 %v2752_v33 }
 0x357   :  { %2830 = vtanh.f32 %v1036_v37 }
 0x35e   :  { %v2825_v41 = vpop.eup %2824 }
 0x35f   :  { %v1040_v43 = vmul.f32 0.5, %v2825_v41  ;;  %v2827_v44 = vpop.eup %2826 }
 0x360   :  { %v1041_v48 = vmul.f32 0.5, %v2827_v44  ;;  %v2829_v51 = vpop.eup %2828 }
 0x361   :  { %v1043_v47 = vadd.f32 0.5, %v1040_v43  ;;  %v2831_v4 = vpop.eup %2830 }
 0x362   :  { %v1044_v53 = vadd.f32 0.5, %v1041_v48  ;;  %v1042_v6 = vmul.f32 0.5, %v2831_v4 }
 0x363   :  { %v1048_v54 = vmul.f32 %v2829_v51, %v1043_v47 }
 0x364   :  { %v1047_v57 = vmul.f32 %v1044_v53, %v3433_v61  ;;  %v1045_v9 = vadd.f32 0.5, %v1042_v6 }
 0x366   :  { %v3475_v58 = vadd.f32 %v1048_v54, %v1047_v57 }
 0x368   :  { %2832 = vtanh.f32 %v3475_v58 }
 0x372   :  { %v2833_v10 = vpop.eup %2832 }
 0x373   :  { %v1051_v13 = vmul.f32 %v2833_v10, %v1045_v9 }
 0x375   :  { %1124 = vmatmul.mubr.f32.vlgmr.msra.gmra.mrb[6].mxu0 %v1051_v13  ;;  %1195 = vmatmul.mubr.f32.vlgmr.msra.gmra.mrb[6].mxu1 %v1051_v13 }
 0x376   :  { %2454 = vmatpush1.bf16.msra.mxu0 %v3040_v14  ;;  %2486 = vmatpush1.bf16.msra.mxu1 %v3049_v17 }
 0x377   :  { %2456 = vmatprep.subr.bf16.mxu0 %v3061_v21  ;;  %2488 = vmatprep.subr.bf16.mxu1 %v3069_v24 }
 0x378   :  { %1294 = vmatprep.mubr.f32.mxu0 %v2938_v1  ;;  %1365 = vmatprep.mubr.f32.mxu1 %v2938_v1 }
 0x37a   :  { %2458 = vmatpush1.bf16.msra.mxu0 %v3081_v28  ;;  %2490 = vmatpush1.bf16.msra.mxu1 %v3090_v31 }
 0x37b   :  { %2460 = vmatprep.subr.bf16.mxu0 %v3102_v35  ;;  %2492 = vmatprep.subr.bf16.mxu1 %v3111_v38 }
 0x37e   :  { %2462 = vmatpush1.bf16.msra.mxu0 %v3123_v42  ;;  %2494 = vmatpush1.bf16.msra.mxu1 %v3132_v45 }
 0x37f   :  { %2464 = vmatprep.subr.bf16.mxu0 %v3144_v49  ;;  %2496 = vmatprep.subr.bf16.mxu1 %v3153_v52 }
 0x382   :  { %2466 = vmatpush1.bf16.msra.mxu0 %v3165_v56  ;;  %2498 = vmatpush1.bf16.msra.mxu1 %v3174_v59 }
 0x383   :  { %2468 = vmatprep.subr.bf16.mxu0 %v3186_v63  ;;  %2500 = vmatprep.subr.bf16.mxu1 %v3195_v2 }
 0x386   :  { %2470 = vmatpush1.bf16.msra.mxu0 %v3207_v7  ;;  %2502 = vmatpush1.bf16.msra.mxu1 %v3216_v11 }
 0x387   :  { %2472 = vmatprep.subr.bf16.mxu0 %v3228_v16  ;;  %2504 = vmatprep.subr.bf16.mxu1 %v3237_v20 }
 0x38a   :  { %2474 = vmatpush1.bf16.msra.mxu0 %v3249_v26  ;;  %2506 = vmatpush1.bf16.msra.mxu1 %v3258_v30 }
 0x38b   :  { %2476 = vmatprep.subr.bf16.mxu0 %v3270_v36  ;;  %2508 = vmatprep.subr.bf16.mxu1 %v3279_v40 }
 0x38e   :  { %2478 = vmatpush1.bf16.msra.mxu0 %v3291_v46  ;;  %2510 = vmatpush1.bf16.msra.mxu1 %v3300_v50 }
 0x38f   :  { %2480 = vmatprep.subr.bf16.mxu0 %v3312_v55  ;;  %2512 = vmatprep.subr.bf16.mxu1 %v3321_v60 }
 0x392   :  { %2482 = vmatpush1.bf16.msra.mxu0 %v3327_v62  ;;  %2514 = vmatpush1.bf16.msra.mxu1 %v3330_v0 }
 0x393   :  { %2516 = vmatprep.subr.bf16.mxu0 %v3015_v5  ;;  %2548 = vmatprep.subr.bf16.mxu1 %v3023_v8 }
 0x448   :  { %v1125_v61 = vpop.f32.mrb[6].mxu0  ;;  %v1196_v3 = vpop.f32.mrb[6].mxu1 }
 0x449   :  { %v2737_v18 = vadd.f32 %v1125_v61, %v3379_v12  ;;  %v1127_v19 = vpop.f32.mrb[7].mxu0  ;;  %v1198_v22 = vpop.f32.mrb[7].mxu1  ;;  %v2753_v33 = vadd.f32 %v1196_v3, %v3388_v39 }
 0x44a   :  { %v2738_v23 = vadd.f32 %v1127_v19, %v3381_v15  ;;  %v2754_v32 = vadd.f32 %v1198_v22, %v3384_v25 }
 0x44b   :  { %v1205_v27 = vmul.f32 0.5, %v2737_v18  ;;  %v1207_v34 = vmul.f32 0.5, %v2753_v33 }
 0x44c   :  { %v1206_v29 = vmul.f32 0.5, %v2738_v23 }
 0x44d   :  { %2834 = vtanh.f32 %v1205_v27 }
 0x44e   :  { %2836 = vtanh.f32 %v1206_v29 }
 0x44f   :  { %2838 = vtanh.f32 %v2754_v32 }
 0x450   :  { %2840 = vtanh.f32 %v1207_v34 }
 0x457   :  { %v2835_v37 = vpop.eup %2834 }
 0x458   :  { %v1211_v41 = vmul.f32 0.5, %v2835_v37  ;;  %v2837_v43 = vpop.eup %2836 }
 0x459   :  { %v1212_v47 = vmul.f32 0.5, %v2837_v43  ;;  %v2839_v48 = vpop.eup %2838 }
 0x45a   :  { %v1214_v44 = vadd.f32 0.5, %v1211_v41  ;;  %v2841_v4 = vpop.eup %2840 }
 0x45b   :  { %v1215_v51 = vadd.f32 0.5, %v1212_v47  ;;  %v1213_v6 = vmul.f32 0.5, %v2841_v4 }
 0x45c   :  { %v1219_v53 = vmul.f32 %v2839_v48, %v1214_v44 }
 0x45d   :  { %v1218_v54 = vmul.f32 %v1215_v51, %v3475_v58  ;;  %v1216_v9 = vadd.f32 0.5, %v1213_v6 }
 0x45f   :  { %v3517_v57 = vadd.f32 %v1219_v53, %v1218_v54 }
 0x461   :  { %2842 = vtanh.f32 %v3517_v57 }
 0x46b   :  { %v2843_v10 = vpop.eup %2842 }
 0x46c   :  { %v1222_v13 = vmul.f32 %v2843_v10, %v1216_v9 }
 0x46e   :  { %1295 = vmatmul.mubr.f32.vlgmr.msra.gmra.mrb[8].mxu0 %v1222_v13  ;;  %1366 = vmatmul.mubr.f32.vlgmr.msra.gmra.mrb[8].mxu1 %v1222_v13 }
 0x46f   :  { %2518 = vmatpush1.bf16.msra.mxu0 %v3040_v14  ;;  %2550 = vmatpush1.bf16.msra.mxu1 %v3049_v17 }
 0x470   :  { %2520 = vmatprep.subr.bf16.mxu0 %v3061_v21  ;;  %2552 = vmatprep.subr.bf16.mxu1 %v3069_v24 }
 0x471   :  { %1465 = vmatprep.mubr.f32.mxu0 %v2938_v1  ;;  %1536 = vmatprep.mubr.f32.mxu1 %v2938_v1 }
 0x473   :  { %2522 = vmatpush1.bf16.msra.mxu0 %v3081_v28  ;;  %2554 = vmatpush1.bf16.msra.mxu1 %v3090_v31 }
 0x474   :  { %2524 = vmatprep.subr.bf16.mxu0 %v3102_v35  ;;  %2556 = vmatprep.subr.bf16.mxu1 %v3111_v38 }
 0x477   :  { %2526 = vmatpush1.bf16.msra.mxu0 %v3123_v42  ;;  %2558 = vmatpush1.bf16.msra.mxu1 %v3132_v45 }
 0x478   :  { %2528 = vmatprep.subr.bf16.mxu0 %v3144_v49  ;;  %2560 = vmatprep.subr.bf16.mxu1 %v3153_v52 }
 0x47b   :  { %2530 = vmatpush1.bf16.msra.mxu0 %v3165_v56  ;;  %2562 = vmatpush1.bf16.msra.mxu1 %v3174_v59 }
 0x47c   :  { %2532 = vmatprep.subr.bf16.mxu0 %v3186_v63  ;;  %2564 = vmatprep.subr.bf16.mxu1 %v3195_v2 }
 0x47f   :  { %2534 = vmatpush1.bf16.msra.mxu0 %v3207_v7  ;;  %2566 = vmatpush1.bf16.msra.mxu1 %v3216_v11 }
 0x480   :  { %2536 = vmatprep.subr.bf16.mxu0 %v3228_v16  ;;  %2568 = vmatprep.subr.bf16.mxu1 %v3237_v20 }
 0x483   :  { %2538 = vmatpush1.bf16.msra.mxu0 %v3249_v26  ;;  %2570 = vmatpush1.bf16.msra.mxu1 %v3258_v30 }
 0x484   :  { %2540 = vmatprep.subr.bf16.mxu0 %v3270_v36  ;;  %2572 = vmatprep.subr.bf16.mxu1 %v3279_v40 }
 0x487   :  { %2542 = vmatpush1.bf16.msra.mxu0 %v3291_v46  ;;  %2574 = vmatpush1.bf16.msra.mxu1 %v3300_v50 }
 0x488   :  { %2544 = vmatprep.subr.bf16.mxu0 %v3312_v55  ;;  %2576 = vmatprep.subr.bf16.mxu1 %v3321_v60 }
 0x48b   :  { %2546 = vmatpush1.bf16.msra.mxu0 %v3327_v62  ;;  %2578 = vmatpush1.bf16.msra.mxu1 %v3330_v0 }
 0x48c   :  { %2580 = vmatprep.subr.bf16.mxu0 %v3015_v5  ;;  %2612 = vmatprep.subr.bf16.mxu1 %v3023_v8 }
 0x541   :  { %v1296_v58 = vpop.f32.mrb[8].mxu0  ;;  %v1367_v61 = vpop.f32.mrb[8].mxu1 }
 0x542   :  { %v2739_v3 = vadd.f32 %v1296_v58, %v3379_v12  ;;  %v1298_v18 = vpop.f32.mrb[9].mxu0  ;;  %v1369_v19 = vpop.f32.mrb[9].mxu1  ;;  %v2755_v32 = vadd.f32 %v1367_v61, %v3388_v39 }
 0x543   :  { %v2740_v22 = vadd.f32 %v1298_v18, %v3381_v15  ;;  %v2756_v29 = vadd.f32 %v1369_v19, %v3384_v25 }
 0x544   :  { %v1376_v23 = vmul.f32 0.5, %v2739_v3  ;;  %v1378_v33 = vmul.f32 0.5, %v2755_v32 }
 0x545   :  { %v1377_v27 = vmul.f32 0.5, %v2740_v22 }
 0x546   :  { %2844 = vtanh.f32 %v1376_v23 }
 0x547   :  { %2846 = vtanh.f32 %v1377_v27 }
 0x548   :  { %2848 = vtanh.f32 %v2756_v29 }
 0x549   :  { %2850 = vtanh.f32 %v1378_v33 }
 0x550   :  { %v2845_v34 = vpop.eup %2844 }
 0x551   :  { %v1382_v37 = vmul.f32 0.5, %v2845_v34  ;;  %v2847_v41 = vpop.eup %2846 }
 0x552   :  { %v1383_v44 = vmul.f32 0.5, %v2847_v41  ;;  %v2849_v47 = vpop.eup %2848 }
 0x553   :  { %v1385_v43 = vadd.f32 0.5, %v1382_v37  ;;  %v2851_v4 = vpop.eup %2850 }
 0x554   :  { %v1386_v48 = vadd.f32 0.5, %v1383_v44  ;;  %v1384_v6 = vmul.f32 0.5, %v2851_v4 }
 0x555   :  { %v1390_v51 = vmul.f32 %v2849_v47, %v1385_v43 }
 0x556   :  { %v1389_v53 = vmul.f32 %v1386_v48, %v3517_v57  ;;  %v1387_v9 = vadd.f32 0.5, %v1384_v6 }
 0x558   :  { %v3559_v54 = vadd.f32 %v1390_v51, %v1389_v53 }
 0x55a   :  { %2852 = vtanh.f32 %v3559_v54 }
 0x564   :  { %v2853_v10 = vpop.eup %2852 }
 0x565   :  { %v1393_v13 = vmul.f32 %v2853_v10, %v1387_v9  ;;  %v1910_v10 = vld [vmem:[#allocation5 + $0x18] sm:$0xff] }
 0x567   :  { %1466 = vmatmul.mubr.f32.vlgmr.msra.gmra.mrb[10].mxu0 %v1393_v13  ;;  %1537 = vmatmul.mubr.f32.vlgmr.msra.gmra.mrb[10].mxu1 %v1393_v13 }
 0x568   :  { %2582 = vmatpush1.bf16.msra.mxu0 %v3040_v14  ;;  %2614 = vmatpush1.bf16.msra.mxu1 %v3049_v17 }
 0x569   :  { %2584 = vmatprep.subr.bf16.mxu0 %v3061_v21  ;;  %2616 = vmatprep.subr.bf16.mxu1 %v3069_v24 }
 0x56a   :  { %1636 = vmatprep.mubr.f32.mxu0 %v2938_v1  ;;  %1707 = vmatprep.mubr.f32.mxu1 %v2938_v1 }
 0x56c   :  { %2586 = vmatpush1.bf16.msra.mxu0 %v3081_v28  ;;  %2618 = vmatpush1.bf16.msra.mxu1 %v3090_v31 }
 0x56d   :  { %2588 = vmatprep.subr.bf16.mxu0 %v3102_v35  ;;  %2620 = vmatprep.subr.bf16.mxu1 %v3111_v38 }
 0x570   :  { %2590 = vmatpush1.bf16.msra.mxu0 %v3123_v42  ;;  %2622 = vmatpush1.bf16.msra.mxu1 %v3132_v45 }
 0x571   :  { %2592 = vmatprep.subr.bf16.mxu0 %v3144_v49  ;;  %2624 = vmatprep.subr.bf16.mxu1 %v3153_v52 }
 0x574   :  { %2594 = vmatpush1.bf16.msra.mxu0 %v3165_v56  ;;  %2626 = vmatpush1.bf16.msra.mxu1 %v3174_v59 }
 0x575   :  { %2596 = vmatprep.subr.bf16.mxu0 %v3186_v63  ;;  %2628 = vmatprep.subr.bf16.mxu1 %v3195_v2 }
 0x578   :  { %2598 = vmatpush1.bf16.msra.mxu0 %v3207_v7  ;;  %2630 = vmatpush1.bf16.msra.mxu1 %v3216_v11 }
 0x579   :  { %2600 = vmatprep.subr.bf16.mxu0 %v3228_v16  ;;  %2632 = vmatprep.subr.bf16.mxu1 %v3237_v20 }
 0x57c   :  { %2602 = vmatpush1.bf16.msra.mxu0 %v3249_v26  ;;  %2634 = vmatpush1.bf16.msra.mxu1 %v3258_v30 }
 0x57d   :  { %2604 = vmatprep.subr.bf16.mxu0 %v3270_v36  ;;  %2636 = vmatprep.subr.bf16.mxu1 %v3279_v40 }
 0x580   :  { %2606 = vmatpush1.bf16.msra.mxu0 %v3291_v46  ;;  %2638 = vmatpush1.bf16.msra.mxu1 %v3300_v50 }
 0x581   :  { %2608 = vmatprep.subr.bf16.mxu0 %v3312_v55  ;;  %2640 = vmatprep.subr.bf16.mxu1 %v3321_v60 }
 0x584   :  { %2610 = vmatpush1.bf16.msra.mxu0 %v3327_v62  ;;  %2642 = vmatpush1.bf16.msra.mxu1 %v3330_v0 }
 0x585   :  { %2644 = vmatprep.subr.bf16.mxu0 %v3015_v5  ;;  %2676 = vmatprep.subr.bf16.mxu1 %v3023_v8 }
 0x63a   :  { %v1467_v57 = vpop.f32.mrb[10].mxu0  ;;  %v1538_v58 = vpop.f32.mrb[10].mxu1 }
 0x63b   :  { %v2741_v61 = vadd.f32 %v1467_v57, %v3379_v12  ;;  %v1469_v3 = vpop.f32.mrb[11].mxu0  ;;  %v1540_v18 = vpop.f32.mrb[11].mxu1  ;;  %v2757_v29 = vadd.f32 %v1538_v58, %v3388_v39  ;;  %v1911_v57 = vld [vmem:[#allocation5 + $0x20] sm:$0xff]  ;;  %v1912_v58 = vld [vmem:[#allocation5 + $0x28] sm:$0xff] }
 0x63c   :  { %v2742_v19 = vadd.f32 %v1469_v3, %v3381_v15  ;;  %v2758_v27 = vadd.f32 %v1540_v18, %v3384_v25  ;;  %v1913_v3 = vld [vmem:[#allocation5 + $0x30] sm:$0xff]  ;;  %v1914_v18 = vld [vmem:[#allocation5 + $0x38] sm:$0xff] }
 0x63d   :  { %v1547_v22 = vmul.f32 0.5, %v2741_v61  ;;  %v1549_v5 = vmul.f32 0.5, %v2757_v29  ;;  %v2714_v61 = vpack.c.bf16 %v1912_v58, %v1911_v57  ;;  %v1917_v29 = vld [vmem:[#allocation5 + $0x50] sm:$0xff] }
 0x63e   :  { %v1548_v23 = vmul.f32 0.5, %v2742_v19  ;;  %v2717_v19 = vpack.c.bf16 %v1914_v18, %v1913_v3 }
 0x63f   :  { %2854 = vtanh.f32 %v1547_v22  ;;  %v1915_v22 = vld [vmem:[#allocation5 + $0x40] sm:$0xff] }
 0x640   :  { %2856 = vtanh.f32 %v1548_v23  ;;  %v1916_v23 = vld [vmem:[#allocation5 + $0x48] sm:$0xff] }
 0x641   :  { %2858 = vtanh.f32 %v2758_v27  ;;  %v2720_v27 = vpack.c.bf16 %v1916_v23, %v1915_v22 }
 0x642   :  { %2860 = vtanh.f32 %v1549_v5  ;;  %v1918_v5 = vld [vmem:[#allocation5 + $0x58] sm:$0xff] }
 0x649   :  { %v2855_v32 = vpop.eup %2854 }
 0x64a   :  { %v1553_v8 = vmul.f32 0.5, %v2855_v32  ;;  %v2857_v33 = vpop.eup %2856  ;;  %v2723_v32 = vpack.c.bf16 %v1918_v5, %v1917_v29 }
 0x64b   :  { %v1554_v37 = vmul.f32 0.5, %v2857_v33  ;;  %v2859_v41 = vpop.eup %2858  ;;  %v1920_v33 = vld [vmem:[#allocation5 + $0x68] sm:$0xff] }
 0x64c   :  { %v1556_v34 = vadd.f32 0.5, %v1553_v8  ;;  %v2861_v51 = vpop.eup %2860  ;;  %v1919_v8 = vld [vmem:[#allocation5 + $0x60] sm:$0xff] }
 0x64d   :  { %v1557_v43 = vadd.f32 0.5, %v1554_v37  ;;  %v1555_v53 = vmul.f32 0.5, %v2861_v51  ;;  %v1921_v37 = vld [vmem:[#allocation5 + $0x70] sm:$0xff] }
 0x64e   :  { %v1561_v44 = vmul.f32 %v2859_v41, %v1556_v34  ;;  %v2726_v34 = vpack.c.bf16 %v1920_v33, %v1919_v8  ;;  %v1922_v41 = vld [vmem:[#allocation5 + $0x78] sm:$0xff] }
 0x64f   :  { %v1560_v47 = vmul.f32 %v1557_v43, %v3559_v54  ;;  %v1558_v4 = vadd.f32 0.5, %v1555_v53  ;;  %v1909_v54 = vld [vmem:[#allocation5 + $0x10] sm:$0xff]  ;;  %v2729_v43 = vpack.c.bf16 %v1922_v41, %v1921_v37 }
 0x650   :  { %v2711_v13 = vpack.c.bf16 %v1910_v10, %v1909_v54 }
 0x651   :  { %v3601_v48 = vadd.f32 %v1561_v44, %v1560_v47 }
 0x653   :  { %2862 = vtanh.f32 %v3601_v48 }
 0x65d   :  { %v2863_v6 = vpop.eup %2862 }
 0x65e   :  { %v1564_v9 = vmul.f32 %v2863_v6, %v1558_v4 }
 0x660   :  { %1637 = vmatmul.mubr.f32.vlgmr.msra.gmra.mrb[12].mxu0 %v1564_v9  ;;  %1708 = vmatmul.mubr.f32.vlgmr.msra.gmra.mrb[12].mxu1 %v1564_v9 }
 0x661   :  { %2646 = vmatpush1.bf16.msra.mxu0 %v3040_v14  ;;  %2678 = vmatpush1.bf16.msra.mxu1 %v3049_v17 }
 0x662   :  { %2648 = vmatprep.subr.bf16.mxu0 %v3061_v21  ;;  %2680 = vmatprep.subr.bf16.mxu1 %v3069_v24 }
 0x663   :  { %1807 = vmatprep.mubr.f32.mxu0 %v2938_v1  ;;  %1878 = vmatprep.mubr.f32.mxu1 %v2938_v1 }
 0x665   :  { %2650 = vmatpush1.bf16.msra.mxu0 %v3081_v28  ;;  %2682 = vmatpush1.bf16.msra.mxu1 %v3090_v31 }
 0x666   :  { %2652 = vmatprep.subr.bf16.mxu0 %v3102_v35  ;;  %2684 = vmatprep.subr.bf16.mxu1 %v3111_v38 }
 0x669   :  { %2654 = vmatpush1.bf16.msra.mxu0 %v3123_v42  ;;  %2686 = vmatpush1.bf16.msra.mxu1 %v3132_v45 }
 0x66a   :  { %2656 = vmatprep.subr.bf16.mxu0 %v3144_v49  ;;  %2688 = vmatprep.subr.bf16.mxu1 %v3153_v52 }
 0x66d   :  { %2658 = vmatpush1.bf16.msra.mxu0 %v3165_v56  ;;  %2690 = vmatpush1.bf16.msra.mxu1 %v3174_v59 }
 0x66e   :  { %2660 = vmatprep.subr.bf16.mxu0 %v3186_v63  ;;  %2692 = vmatprep.subr.bf16.mxu1 %v3195_v2 }
 0x671   :  { %2662 = vmatpush1.bf16.msra.mxu0 %v3207_v7  ;;  %2694 = vmatpush1.bf16.msra.mxu1 %v3216_v11 }
 0x672   :  { %2664 = vmatprep.subr.bf16.mxu0 %v3228_v16  ;;  %2696 = vmatprep.subr.bf16.mxu1 %v3237_v20 }
 0x675   :  { %2666 = vmatpush1.bf16.msra.mxu0 %v3249_v26  ;;  %2698 = vmatpush1.bf16.msra.mxu1 %v3258_v30 }
 0x676   :  { %2668 = vmatprep.subr.bf16.mxu0 %v3270_v36  ;;  %2700 = vmatprep.subr.bf16.mxu1 %v3279_v40 }
 0x679   :  { %2670 = vmatpush1.bf16.msra.mxu0 %v3291_v46  ;;  %2702 = vmatpush1.bf16.msra.mxu1 %v3300_v50 }
 0x67a   :  { %2672 = vmatprep.subr.bf16.mxu0 %v3312_v55  ;;  %2704 = vmatprep.subr.bf16.mxu1 %v3321_v60  ;;  %v1907_v55 = vld [vmem:[#allocation5] sm:$0xff]  ;;  %v1908_v60 = vld [vmem:[#allocation5 + $0x8] sm:$0xff] }
 0x67d   :  { %2674 = vmatpush1.bf16.msra.mxu0 %v3327_v62  ;;  %2706 = vmatpush1.bf16.msra.mxu1 %v3330_v0  ;;  %v2708_v62 = vpack.c.bf16 %v1908_v60, %v1907_v55  ;;  %v2939_v0 = vmov 0.0|0.0  }
 0x67e   :  { %2707 = vmatprep.subr.bf16.mxu0 %v2939_v0 }
 0x733   :  { %v1638_v14 = vpop.f32.mrb[12].mxu0  ;;  %v1709_v17 = vpop.f32.mrb[12].mxu1 }
 0x734   :  { %v2743_v21 = vadd.f32 %v1638_v14, %v3379_v12  ;;  %v1640_v24 = vpop.f32.mrb[13].mxu0  ;;  %v1711_v28 = vpop.f32.mrb[13].mxu1  ;;  %v2759_v45 = vadd.f32 %v1709_v17, %v3388_v39 }
 0x735   :  { %v2744_v31 = vadd.f32 %v1640_v24, %v3381_v15  ;;  %v2760_v42 = vadd.f32 %v1711_v28, %v3384_v25 }
 0x736   :  { %v1718_v35 = vmul.f32 0.5, %v2743_v21  ;;  %v1720_v49 = vmul.f32 0.5, %v2759_v45 }
 0x737   :  { %v1719_v38 = vmul.f32 0.5, %v2744_v31 }
 0x738   :  { %2864 = vtanh.f32 %v1718_v35 }
 0x739   :  { %2866 = vtanh.f32 %v1719_v38 }
 0x73a   :  { %2868 = vtanh.f32 %v2760_v42 }
 0x73b   :  { %2870 = vtanh.f32 %v1720_v49 }
 0x742   :  { %v2865_v52 = vpop.eup %2864 }
 0x743   :  { %v1724_v56 = vmul.f32 0.5, %v2865_v52  ;;  %v2867_v59 = vpop.eup %2866 }
 0x744   :  { %v1725_v2 = vmul.f32 0.5, %v2867_v59  ;;  %v2869_v7 = vpop.eup %2868 }
 0x745   :  { %v1727_v63 = vadd.f32 0.5, %v1724_v56  ;;  %v2871_v30 = vpop.eup %2870 }
 0x746   :  { %v1728_v11 = vadd.f32 0.5, %v1725_v2  ;;  %v1726_v36 = vmul.f32 0.5, %v2871_v30 }
 0x747   :  { %v1732_v16 = vmul.f32 %v2869_v7, %v1727_v63 }
 0x748   :  { %v1731_v20 = vmul.f32 %v1728_v11, %v3601_v48  ;;  %v1729_v40 = vadd.f32 0.5, %v1726_v36 }
 0x74a   :  { %v3641_v26 = vadd.f32 %v1732_v16, %v1731_v20 }
 0x74c   :  { %2872 = vtanh.f32 %v3641_v26 }
 0x756   :  { %v2873_v46 = vpop.eup %2872 }
 0x757   :  { %v1735_v50 = vmul.f32 %v2873_v46, %v1729_v40 }
 0x759   :  { %1808 = vmatmul.mubr.f32.vlgmr.msra.gmra.mrb[14].mxu0 %v1735_v50  ;;  %1879 = vmatmul.mubr.f32.vlgmr.msra.gmra.mrb[14].mxu1 %v1735_v50 }
 0x75a   :  { %2709 = vmatpush3.bf16.msra.mxu0 %v2708_v62  ;;  %2064 = vmatprep.mubr.msk.f32.mxu0 %vm2940_vm0, %v2938_v1 }
 0x75b   :  { %2710 = vmatprep.subr.bf16.mxu0 %v2939_v0 }
 0x75e   :  { %2712 = vmatpush3.bf16.msra.mxu0 %v2711_v13 }
 0x75f   :  { %2713 = vmatprep.subr.bf16.mxu0 %v2939_v0 }
 0x762   :  { %2715 = vmatpush3.bf16.msra.mxu0 %v2714_v61 }
 0x763   :  { %2716 = vmatprep.subr.bf16.mxu0 %v2939_v0 }
 0x766   :  { %2718 = vmatpush3.bf16.msra.mxu0 %v2717_v19 }
 0x767   :  { %2719 = vmatprep.subr.bf16.mxu0 %v2939_v0 }
 0x76a   :  { %2721 = vmatpush3.bf16.msra.mxu0 %v2720_v27 }
 0x76b   :  { %2722 = vmatprep.subr.bf16.mxu0 %v2939_v0 }
 0x76e   :  { %2724 = vmatpush3.bf16.msra.mxu0 %v2723_v32 }
 0x76f   :  { %2725 = vmatprep.subr.bf16.mxu0 %v2939_v0 }
 0x772   :  { %2727 = vmatpush3.bf16.msra.mxu0 %v2726_v34 }
 0x773   :  { %2728 = vmatprep.subr.bf16.mxu0 %v2939_v0 }
 0x776   :  { %2730 = vmatpush3.bf16.msra.mxu0 %v2729_v43 }
 0x82c   :  { %v1809_v44 = vpop.f32.mrb[14].mxu0  ;;  %v1880_v47 = vpop.f32.mrb[14].mxu1 }
 0x82d   :  { %v2745_v48 = vadd.f32 %v1809_v44, %v3379_v12  ;;  %v1811_v51 = vpop.f32.mrb[15].mxu0  ;;  %v1882_v53 = vpop.f32.mrb[15].mxu1  ;;  %v2761_v14 = vadd.f32 %v1880_v47, %v3388_v39  ;;  %v2014_v39 = vld [vmem:[%s3661_s5] ss:$0 sm:$0xff] }
 0x82e   :  { %v2746_v4 = vadd.f32 %v1811_v51, %v3381_v15  ;;  %v2762_v1 = vadd.f32 %v1882_v53, %v3384_v25 }
 0x82f   :  { %v1889_v6 = vmul.f32 0.5, %v2745_v48  ;;  %v1891_v17 = vmul.f32 0.5, %v2761_v14 }
 0x830   :  { %v1890_v9 = vmul.f32 0.5, %v2746_v4 }
 0x831   :  { %2874 = vtanh.f32 %v1889_v6 }
 0x832   :  { %2876 = vtanh.f32 %v1890_v9 }
 0x833   :  { %2878 = vtanh.f32 %v2762_v1 }
 0x834   :  { %2880 = vtanh.f32 %v1891_v17 }
 0x83b   :  { %v2875_v21 = vpop.eup %2874 }
 0x83c   :  { %v1895_v24 = vmul.f32 0.5, %v2875_v21  ;;  %v2877_v28 = vpop.eup %2876 }
 0x83d   :  { %v1896_v12 = vmul.f32 0.5, %v2877_v28  ;;  %v2879_v35 = vpop.eup %2878 }
 0x83e   :  { %v1898_v31 = vadd.f32 0.5, %v1895_v24  ;;  %v2881_v49 = vpop.eup %2880 }
 0x83f   :  { %v1899_v38 = vadd.f32 0.5, %v1896_v12  ;;  %v1897_v25 = vmul.f32 0.5, %v2881_v49 }
 0x840   :  { %v1903_v42 = vmul.f32 %v2879_v35, %v1898_v31 }
 0x841   :  { %v1902_v15 = vmul.f32 %v1899_v38, %v3641_v26  ;;  %v1900_v52 = vadd.f32 0.5, %v1897_v25 }
 0x843   :  { %v1904_v45 = vadd.f32 %v1903_v42, %v1902_v15 }
 0x845   :  { %2882 = vtanh.f32 %v1904_v45 }
 0x84f   :  { %v2883_v56 = vpop.eup %2882 }
 0x850   :  { %v1906_v59 = vmul.f32 %v2883_v56, %v1900_v52 }
 0x852   :  { %2065 = vmatmul.mubr.f32.vlgmr.msra.gmra.mrb[16].mxu0 %v1906_v59 }
 0x925   :  { %v1996_v63 = vpop.f32.mrb[16].mxu0 }
 0x926   :  { %v1997_v2 = vadd.f32 %v2014_v39, %v1996_v63  ;;  %v2066_v7 = vpop.f32.mrb[17].mxu0 }
 0x928   :  { %2000 = vst [vmem:[%s3662_s6] sm:$0xff] %v1997_v2 }
 0x929   :  { %2005 = vsyncpa [#allocation4], 1 }
 0x92a   :  { %2006 = vsyncpa [#allocation6], 1 }

</bundles_post_ra>
